<compile_context>
chip_gen: v7x
topology: tpu7x:2x2x1
jax: 0.10.0
libtpu: 0.0.40
codegen_flags: <defaults>
</compile_context>

<pallas_src>
import numpy as np
import jax
import jax.numpy as jnp
from jax import lax
from jax.experimental import pallas as pl
from jax.experimental.pallas import tpu as pltpu


# ---------------------------------------------------------------------------
# Fused LeNet-5 kernel (one grid step == one batch sample)
# ---------------------------------------------------------------------------

def _lenet5_kernel(x_ref,                     # (28, 28)  input image
                   g1_ref, r1_ref, c1b_ref,   # conv1: (5,28,168), (5,28,28), (1,168)
                   s1_ref,                    # pool1 row-select: (28, 28)
                   g2_ref, c2b_ref,           # conv2: (5,84,160), (1,160)
                   s2_ref,                    # pool2 row-select: (10, 10)
                   a1_ref, b1_ref,            # fc1: (5,80,120), (1,120)
                   w2_ref, b2_ref,            # fc2: (120,84), (1,84)
                   w3_ref, b3_ref,            # fc3: (84,10), (1,10)
                   out_ref):                  # (1, 10)
    f32 = jnp.float32
    xv = x_ref[...]                                                    # (28, 28)

    # conv1 (5x5, pad=2) + ReLU.  out1[oh, par*84 + co*14 + pw], ow = 2*pw+par
    acc1 = None
    for di in range(5):
        z = jnp.dot(xv, g1_ref[di], preferred_element_type=f32)        # (28, 168)
        z = jnp.dot(r1_ref[di], z, preferred_element_type=f32)         # zero-padded row shift
        acc1 = z if acc1 is None else acc1 + z
    out1 = jnp.maximum(acc1 + c1b_ref[...], 0.0)                        # (28, 168)

    # 2x2 maxpool: contiguous column-parity max + even/odd row-select matmul
    wp1 = jnp.maximum(out1[:, 0:84], out1[:, 84:168])                   # (28, 84)
    sel1 = jnp.dot(s1_ref[...], wp1, preferred_element_type=f32)        # (28, 84)
    p1 = jnp.maximum(sel1[0:14, :], sel1[14:28, :])                     # (14, 84) [ph, ci*14+pw]

    # conv2 (5x5, valid) + ReLU.  out2[oh, par*80 + co*5 + pw]
    acc2 = None
    for di in range(5):
        z = jnp.dot(p1[di:di + 10, :], g2_ref[di], preferred_element_type=f32)
        acc2 = z if acc2 is None else acc2 + z
    out2 = jnp.maximum(acc2 + c2b_ref[...], 0.0)                        # (10, 160)

    # 2x2 maxpool
    wp2 = jnp.maximum(out2[:, 0:80], out2[:, 80:160])                   # (10, 80)
    sel2 = jnp.dot(s2_ref[...], wp2, preferred_element_type=f32)        # (10, 80)
    p2 = jnp.maximum(sel2[0:5, :], sel2[5:10, :])                       # (5, 80) [ph, co*5+pw]

    # fc1 + ReLU (the 400-wide flatten is folded into A1's per-row blocks)
    hacc = None
    for r in range(5):
        t = jnp.dot(p2[r:r + 1, :], a1_ref[r], preferred_element_type=f32)   # (1, 120)
        hacc = t if hacc is None else hacc + t
    h1 = jnp.maximum(hacc + b1_ref[...], 0.0)                           # (1, 120)

    # fc2 + ReLU, fc3
    h2 = jnp.maximum(jnp.dot(h1, w2_ref[...], preferred_element_type=f32) + b2_ref[...], 0.0)
    logits = jnp.dot(h2, w3_ref[...], preferred_element_type=f32) + b3_ref[...]
    out_ref[...] = logits.astype(out_ref.dtype)


def _full_spec(shape):
    nd = len(shape)
    return pl.BlockSpec(shape, lambda b: (0,) * nd)


def lenet5_pallas(kp, x):
    """x: (N, 1, 28, 28) float32 -> logits (N, 10) float32."""
    N = x.shape[0]
    out = pl.pallas_call(
        _lenet5_kernel,
        out_shape=jax.ShapeDtypeStruct((N, 1, 10), jnp.float32),
        grid=(N,),
        in_specs=[
            pl.BlockSpec((None, None, 28, 28), lambda b: (b, 0, 0, 0)),  # x
            _full_spec((5, 28, 168)),   # g1 (conv1 Toeplitz)
            _full_spec((5, 28, 28)),    # r1 (conv1 row shifts, zero-padded)
            _full_spec((1, 168)),       # conv1 bias row
            _full_spec((28, 28)),       # s1 (pool1 row select)
            _full_spec((5, 84, 160)),   # g2 (conv2 Toeplitz)
            _full_spec((1, 160)),       # conv2 bias row
            _full_spec((10, 10)),       # s2 (pool2 row select)
            _full_spec((5, 80, 120)),   # a1 (fc1 weight, kernel layout)
            _full_spec((1, 120)),       # fc1 bias
            _full_spec((120, 84)),      # fc2 weight (K, N)
            _full_spec((1, 84)),        # fc2 bias
            _full_spec((84, 10)),       # fc3 weight (K, N)
            _full_spec((1, 10)),        # fc3 bias
        ],
        out_specs=pl.BlockSpec((None, 1, 10), lambda b: (b, 0, 0)),
        compiler_params=pltpu.CompilerParams(
            dimension_semantics=("parallel",)),
    )(x, kp["g1"], kp["r1"], kp["c1b"], kp["s1"],
      kp["g2"], kp["c2b"], kp["s2"],
      kp["a1"], kp["b1"], kp["w2"], kp["b2"], kp["w3"], kp["b3"])
    return out.reshape(N, 10)


lenet5_forward = jax.jit(lenet5_pallas)


# ---------------------------------------------------------------------------
# Parameter init (PyTorch layout) and one-time re-layout for the kernel
# ---------------------------------------------------------------------------

def init_params(key):
    ks = jax.random.split(key, 10)
    scale = 0.1
    return {
        "conv1_w": scale * jax.random.normal(ks[0], (6, 1, 5, 5), jnp.float32),
        "conv1_b": scale * jax.random.normal(ks[1], (6,), jnp.float32),
        "conv2_w": scale * jax.random.normal(ks[2], (16, 6, 5, 5), jnp.float32),
        "conv2_b": scale * jax.random.normal(ks[3], (16,), jnp.float32),
        "fc1_w": scale * jax.random.normal(ks[4], (120, 400), jnp.float32),
        "fc1_b": scale * jax.random.normal(ks[5], (120,), jnp.float32),
        "fc2_w": scale * jax.random.normal(ks[6], (84, 120), jnp.float32),
        "fc2_b": scale * jax.random.normal(ks[7], (84,), jnp.float32),
        "fc3_w": scale * jax.random.normal(ks[8], (10, 84), jnp.float32),
        "fc3_b": scale * jax.random.normal(ks[9], (10,), jnp.float32),
    }


def prepare_params(p):
    """One-time re-layout of the PyTorch-style params into the kernel layout."""
    w1 = np.asarray(p["conv1_w"], np.float32)   # (6, 1, 5, 5)
    b1 = np.asarray(p["conv1_b"], np.float32)
    w2 = np.asarray(p["conv2_w"], np.float32)   # (16, 6, 5, 5)
    b2 = np.asarray(p["conv2_b"], np.float32)
    fc1_w = np.asarray(p["fc1_w"], np.float32)  # (120, 400)

    # conv1 width-Toeplitz G1[di]: 28 input cols -> 168 output cols,
    # output column = parity*84 + co*14 + pw, with ow = 2*pw + parity, pad=2.
    g1 = np.zeros((5, 28, 168), np.float32)
    c1b = np.zeros((1, 168), np.float32)
    for parity in range(2):
        for co in range(6):
            for pw in range(14):
                col = parity * 84 + co * 14 + pw
                ow = 2 * pw + parity
                c1b[0, col] = b1[co]
                for di in range(5):
                    for dj in range(5):
                        c = ow + dj - 2
                        if 0 <= c < 28:
                            g1[di, c, col] = w1[co, 0, di, dj]

    # conv1 zero-padded row-shift matrices R1[di]: out row oh <- in row oh+di-2
    r1 = np.zeros((5, 28, 28), np.float32)
    for di in range(5):
        for oh in range(28):
            r = oh + di - 2
            if 0 <= r < 28:
                r1[di, oh, r] = 1.0

    # conv2 width-Toeplitz G2[di]: 6*14 input cols -> 160 output cols,
    # output column = parity*80 + co*5 + pw, ow = 2*pw + parity (valid conv).
    g2 = np.zeros((5, 84, 160), np.float32)
    c2b = np.zeros((1, 160), np.float32)
    for parity in range(2):
        for co in range(16):
            for pw in range(5):
                col = parity * 80 + co * 5 + pw
                ow = 2 * pw + parity
                c2b[0, col] = b2[co]
                for ci in range(6):
                    for di in range(5):
                        for dj in range(5):
                            g2[di, ci * 14 + ow + dj, col] = w2[co, ci, di, dj]

    # even/odd row-selection matrices for the 2x2 pools
    s1 = np.zeros((28, 28), np.float32)
    for r in range(14):
        s1[r, 2 * r] = 1.0
        s1[r + 14, 2 * r + 1] = 1.0
    s2 = np.zeros((10, 10), np.float32)
    for r in range(5):
        s2[r, 2 * r] = 1.0
        s2[r + 5, 2 * r + 1] = 1.0

    # fc1 weight regrouped to the kernel's (pool-row, channel, pool-col) order
    a1 = np.zeros((5, 80, 120), np.float32)
    for ph in range(5):
        for co in range(16):
            for pw in range(5):
                a1[ph, co * 5 + pw, :] = fc1_w[:, co * 25 + ph * 5 + pw]

    return {
        "g1": jnp.asarray(g1), "r1": jnp.asarray(r1), "c1b": jnp.asarray(c1b),
        "s1": jnp.asarray(s1),
        "g2": jnp.asarray(g2), "c2b": jnp.asarray(c2b), "s2": jnp.asarray(s2),
        "a1": jnp.asarray(a1),
        "b1": jnp.asarray(p["fc1_b"], jnp.float32).reshape(1, 120),
        "w2": jnp.asarray(np.asarray(p["fc2_w"], np.float32).T),   # (120, 84)
        "b2": jnp.asarray(p["fc2_b"], jnp.float32).reshape(1, 84),
        "w3": jnp.asarray(np.asarray(p["fc3_w"], np.float32).T),   # (84, 10)
        "b3": jnp.asarray(p["fc3_b"], jnp.float32).reshape(1, 10),
    }


# ---------------------------------------------------------------------------
# Pure-JAX reference (PyTorch semantics) for verification
# ---------------------------------------------------------------------------

def lenet5_reference(p, x):
    hi = lax.Precision.HIGHEST
    y = lax.conv_general_dilated(x, p["conv1_w"], (1, 1), ((2, 2), (2, 2)),
                                 dimension_numbers=("NCHW", "OIHW", "NCHW"),
                                 precision=hi)
    y = jnp.maximum(y + p["conv1_b"][None, :, None, None], 0.0)
    y = lax.reduce_window(y, -jnp.inf, lax.max, (1, 1, 2, 2), (1, 1, 2, 2), "VALID")
    y = lax.conv_general_dilated(y, p["conv2_w"], (1, 1), ((0, 0), (0, 0)),
                                 dimension_numbers=("NCHW", "OIHW", "NCHW"),
                                 precision=hi)
    y = jnp.maximum(y + p["conv2_b"][None, :, None, None], 0.0)
    y = lax.reduce_window(y, -jnp.inf, lax.max, (1, 1, 2, 2), (1, 1, 2, 2), "VALID")
    y = y.reshape(y.shape[0], 400)
    y = jnp.maximum(jnp.dot(y, p["fc1_w"].T, precision=hi) + p["fc1_b"], 0.0)
    y = jnp.maximum(jnp.dot(y, p["fc2_w"].T, precision=hi) + p["fc2_b"], 0.0)
    return jnp.dot(y, p["fc3_w"].T, precision=hi) + p["fc3_b"]


if __name__ == "__main__":
    key = jax.random.PRNGKey(0)
    k_x, k_p = jax.random.split(key)
    # MNIST-shaped input: batch=2, 1 channel, 28x28 (required by fc1 = 16*5*5).
    x = jax.random.normal(k_x, (2, 1, 28, 28), jnp.float32)
    params = init_params(k_p)
    kparams = prepare_params(params)

    out = jax.block_until_ready(lenet5_forward(kparams, x))
    assert out.shape == (2, 10) and out.dtype == jnp.float32

    ref = jax.block_until_ready(lenet5_reference(params, x))
    err = float(jnp.max(jnp.abs(out - ref)))
    assert err < 1e-2, f"mismatch vs reference: max abs err = {err}"
    print("KERNEL_OK")
</pallas_src>

<mosaic_0001>
module attributes {stable_mosaic.version = 11 : i64} {
  func.func @_lenet5_kernel(%arg0: i32, %arg1: memref<1x1x28x28xf32, #tpu.memory_space<vmem>>, %arg2: memref<5x28x168xf32, #tpu.memory_space<vmem>>, %arg3: memref<5x28x28xf32, #tpu.memory_space<vmem>>, %arg4: memref<1x168xf32, #tpu.memory_space<vmem>>, %arg5: memref<28x28xf32, #tpu.memory_space<vmem>>, %arg6: memref<5x84x160xf32, #tpu.memory_space<vmem>>, %arg7: memref<1x160xf32, #tpu.memory_space<vmem>>, %arg8: memref<10x10xf32, #tpu.memory_space<vmem>>, %arg9: memref<5x80x120xf32, #tpu.memory_space<vmem>>, %arg10: memref<1x120xf32, #tpu.memory_space<vmem>>, %arg11: memref<120x84xf32, #tpu.memory_space<vmem>>, %arg12: memref<1x84xf32, #tpu.memory_space<vmem>>, %arg13: memref<84x10xf32, #tpu.memory_space<vmem>>, %arg14: memref<1x10xf32, #tpu.memory_space<vmem>>, %arg15: memref<1x1x10xf32, #tpu.memory_space<vmem>>) attributes {dimension_semantics = [#tpu.dimension_semantics<parallel>], iteration_bounds = array<i64: 2>, scalar_prefetch = 0 : i64, scratch_operands = 0 : i64, tpu.core_type = #tpu.core_type<tc>, window_params = [{transform_indices = @transform_0, window_bounds = array<i64: 1, 1, 28, 28>}, {pipeline_mode = #tpu.pipeline_mode<synchronous>, transform_indices = @transform_1, window_bounds = array<i64: 5, 28, 168>}, {pipeline_mode = #tpu.pipeline_mode<synchronous>, transform_indices = @transform_2, window_bounds = array<i64: 5, 28, 28>}, {pipeline_mode = #tpu.pipeline_mode<synchronous>, transform_indices = @transform_3, window_bounds = array<i64: 1, 168>}, {pipeline_mode = #tpu.pipeline_mode<synchronous>, transform_indices = @transform_4, window_bounds = array<i64: 28, 28>}, {pipeline_mode = #tpu.pipeline_mode<synchronous>, transform_indices = @transform_5, window_bounds = array<i64: 5, 84, 160>}, {pipeline_mode = #tpu.pipeline_mode<synchronous>, transform_indices = @transform_6, window_bounds = array<i64: 1, 160>}, {pipeline_mode = #tpu.pipeline_mode<synchronous>, transform_indices = @transform_7, window_bounds = array<i64: 10, 10>}, {pipeline_mode = #tpu.pipeline_mode<synchronous>, transform_indices = @transform_8, window_bounds = array<i64: 5, 80, 120>}, {pipeline_mode = #tpu.pipeline_mode<synchronous>, transform_indices = @transform_9, window_bounds = array<i64: 1, 120>}, {pipeline_mode = #tpu.pipeline_mode<synchronous>, transform_indices = @transform_10, window_bounds = array<i64: 120, 84>}, {pipeline_mode = #tpu.pipeline_mode<synchronous>, transform_indices = @transform_11, window_bounds = array<i64: 1, 84>}, {pipeline_mode = #tpu.pipeline_mode<synchronous>, transform_indices = @transform_12, window_bounds = array<i64: 84, 10>}, {pipeline_mode = #tpu.pipeline_mode<synchronous>, transform_indices = @transform_13, window_bounds = array<i64: 1, 10>}, {transform_indices = @transform_14, window_bounds = array<i64: 1, 1, 10>}]} {
    %c0 = arith.constant 0 : index
    %c0_0 = arith.constant 0 : index
    %c0_1 = arith.constant 0 : index
    %c0_2 = arith.constant 0 : index
    %0 = vector.load %arg1[%c0, %c0_0, %c0_1, %c0_2] : memref<1x1x28x28xf32, #tpu.memory_space<vmem>>, vector<1x1x28x28xf32>
    %1 = vector.shape_cast %0 : vector<1x1x28x28xf32> to vector<28x28xf32>
    %c0_3 = arith.constant 0 : index
    %c0_4 = arith.constant 0 : index
    %c0_5 = arith.constant 0 : index
    %2 = vector.load %arg2[%c0_3, %c0_4, %c0_5] : memref<5x28x168xf32, #tpu.memory_space<vmem>>, vector<1x28x168xf32>
    %3 = vector.shape_cast %2 : vector<1x28x168xf32> to vector<28x168xf32>
    %cst = arith.constant dense<0.000000e+00> : vector<28x168xf32>
    %4 = tpu.matmul %1, %3, %cst {dimension_numbers = #tpu.dot_dimension_numbers<[1], [0], [0], [1], [0, 0, 1, 1], [], []>} : vector<28x28xf32>, vector<28x168xf32>, vector<28x168xf32> -> vector<28x168xf32>
    %c0_6 = arith.constant 0 : index
    %c0_7 = arith.constant 0 : index
    %c0_8 = arith.constant 0 : index
    %5 = vector.load %arg3[%c0_6, %c0_7, %c0_8] : memref<5x28x28xf32, #tpu.memory_space<vmem>>, vector<1x28x28xf32>
    %6 = vector.shape_cast %5 : vector<1x28x28xf32> to vector<28x28xf32>
    %cst_9 = arith.constant dense<0.000000e+00> : vector<28x168xf32>
    %7 = tpu.matmul %6, %4, %cst_9 {dimension_numbers = #tpu.dot_dimension_numbers<[1], [0], [0], [1], [0, 0, 1, 1], [], []>} : vector<28x28xf32>, vector<28x168xf32>, vector<28x168xf32> -> vector<28x168xf32>
    %c1 = arith.constant 1 : index
    %c0_10 = arith.constant 0 : index
    %c0_11 = arith.constant 0 : index
    %8 = vector.load %arg2[%c1, %c0_10, %c0_11] : memref<5x28x168xf32, #tpu.memory_space<vmem>>, vector<1x28x168xf32>
    %9 = vector.shape_cast %8 : vector<1x28x168xf32> to vector<28x168xf32>
    %cst_12 = arith.constant dense<0.000000e+00> : vector<28x168xf32>
    %10 = tpu.matmul %1, %9, %cst_12 {dimension_numbers = #tpu.dot_dimension_numbers<[1], [0], [0], [1], [0, 0, 1, 1], [], []>} : vector<28x28xf32>, vector<28x168xf32>, vector<28x168xf32> -> vector<28x168xf32>
    %c1_13 = arith.constant 1 : index
    %c0_14 = arith.constant 0 : index
    %c0_15 = arith.constant 0 : index
    %11 = vector.load %arg3[%c1_13, %c0_14, %c0_15] : memref<5x28x28xf32, #tpu.memory_space<vmem>>, vector<1x28x28xf32>
    %12 = vector.shape_cast %11 : vector<1x28x28xf32> to vector<28x28xf32>
    %cst_16 = arith.constant dense<0.000000e+00> : vector<28x168xf32>
    %13 = tpu.matmul %12, %10, %cst_16 {dimension_numbers = #tpu.dot_dimension_numbers<[1], [0], [0], [1], [0, 0, 1, 1], [], []>} : vector<28x28xf32>, vector<28x168xf32>, vector<28x168xf32> -> vector<28x168xf32>
    %14 = arith.addf %7, %13 : vector<28x168xf32>
    %c2 = arith.constant 2 : index
    %c0_17 = arith.constant 0 : index
    %c0_18 = arith.constant 0 : index
    %15 = vector.load %arg2[%c2, %c0_17, %c0_18] : memref<5x28x168xf32, #tpu.memory_space<vmem>>, vector<1x28x168xf32>
    %16 = vector.shape_cast %15 : vector<1x28x168xf32> to vector<28x168xf32>
    %cst_19 = arith.constant dense<0.000000e+00> : vector<28x168xf32>
    %17 = tpu.matmul %1, %16, %cst_19 {dimension_numbers = #tpu.dot_dimension_numbers<[1], [0], [0], [1], [0, 0, 1, 1], [], []>} : vector<28x28xf32>, vector<28x168xf32>, vector<28x168xf32> -> vector<28x168xf32>
    %c2_20 = arith.constant 2 : index
    %c0_21 = arith.constant 0 : index
    %c0_22 = arith.constant 0 : index
    %18 = vector.load %arg3[%c2_20, %c0_21, %c0_22] : memref<5x28x28xf32, #tpu.memory_space<vmem>>, vector<1x28x28xf32>
    %19 = vector.shape_cast %18 : vector<1x28x28xf32> to vector<28x28xf32>
    %cst_23 = arith.constant dense<0.000000e+00> : vector<28x168xf32>
    %20 = tpu.matmul %19, %17, %cst_23 {dimension_numbers = #tpu.dot_dimension_numbers<[1], [0], [0], [1], [0, 0, 1, 1], [], []>} : vector<28x28xf32>, vector<28x168xf32>, vector<28x168xf32> -> vector<28x168xf32>
    %21 = arith.addf %14, %20 : vector<28x168xf32>
    %c3 = arith.constant 3 : index
    %c0_24 = arith.constant 0 : index
    %c0_25 = arith.constant 0 : index
    %22 = vector.load %arg2[%c3, %c0_24, %c0_25] : memref<5x28x168xf32, #tpu.memory_space<vmem>>, vector<1x28x168xf32>
    %23 = vector.shape_cast %22 : vector<1x28x168xf32> to vector<28x168xf32>
    %cst_26 = arith.constant dense<0.000000e+00> : vector<28x168xf32>
    %24 = tpu.matmul %1, %23, %cst_26 {dimension_numbers = #tpu.dot_dimension_numbers<[1], [0], [0], [1], [0, 0, 1, 1], [], []>} : vector<28x28xf32>, vector<28x168xf32>, vector<28x168xf32> -> vector<28x168xf32>
    %c3_27 = arith.constant 3 : index
    %c0_28 = arith.constant 0 : index
    %c0_29 = arith.constant 0 : index
    %25 = vector.load %arg3[%c3_27, %c0_28, %c0_29] : memref<5x28x28xf32, #tpu.memory_space<vmem>>, vector<1x28x28xf32>
    %26 = vector.shape_cast %25 : vector<1x28x28xf32> to vector<28x28xf32>
    %cst_30 = arith.constant dense<0.000000e+00> : vector<28x168xf32>
    %27 = tpu.matmul %26, %24, %cst_30 {dimension_numbers = #tpu.dot_dimension_numbers<[1], [0], [0], [1], [0, 0, 1, 1], [], []>} : vector<28x28xf32>, vector<28x168xf32>, vector<28x168xf32> -> vector<28x168xf32>
    %28 = arith.addf %21, %27 : vector<28x168xf32>
    %c4 = arith.constant 4 : index
    %c0_31 = arith.constant 0 : index
    %c0_32 = arith.constant 0 : index
    %29 = vector.load %arg2[%c4, %c0_31, %c0_32] : memref<5x28x168xf32, #tpu.memory_space<vmem>>, vector<1x28x168xf32>
    %30 = vector.shape_cast %29 : vector<1x28x168xf32> to vector<28x168xf32>
    %cst_33 = arith.constant dense<0.000000e+00> : vector<28x168xf32>
    %31 = tpu.matmul %1, %30, %cst_33 {dimension_numbers = #tpu.dot_dimension_numbers<[1], [0], [0], [1], [0, 0, 1, 1], [], []>} : vector<28x28xf32>, vector<28x168xf32>, vector<28x168xf32> -> vector<28x168xf32>
    %c4_34 = arith.constant 4 : index
    %c0_35 = arith.constant 0 : index
    %c0_36 = arith.constant 0 : index
    %32 = vector.load %arg3[%c4_34, %c0_35, %c0_36] : memref<5x28x28xf32, #tpu.memory_space<vmem>>, vector<1x28x28xf32>
    %33 = vector.shape_cast %32 : vector<1x28x28xf32> to vector<28x28xf32>
    %cst_37 = arith.constant dense<0.000000e+00> : vector<28x168xf32>
    %34 = tpu.matmul %33, %31, %cst_37 {dimension_numbers = #tpu.dot_dimension_numbers<[1], [0], [0], [1], [0, 0, 1, 1], [], []>} : vector<28x28xf32>, vector<28x168xf32>, vector<28x168xf32> -> vector<28x168xf32>
    %35 = arith.addf %28, %34 : vector<28x168xf32>
    %c0_38 = arith.constant 0 : index
    %c0_39 = arith.constant 0 : index
    %36 = vector.load %arg4[%c0_38, %c0_39] : memref<1x168xf32, #tpu.memory_space<vmem>>, vector<1x168xf32>
    %37 = vector.broadcast %36 : vector<1x168xf32> to vector<28x168xf32>
    %38 = arith.addf %35, %37 : vector<28x168xf32>
    %cst_40 = arith.constant 0.000000e+00 : f32
    %39 = vector.broadcast %cst_40 : f32 to vector<28x168xf32>
    %40 = arith.maximumf %38, %39 : vector<28x168xf32>
    %41 = vector.extract_strided_slice %40 {offsets = [0, 0], sizes = [28, 84], strides = [1, 1]} : vector<28x168xf32> to vector<28x84xf32>
    %42 = vector.extract_strided_slice %40 {offsets = [0, 84], sizes = [28, 84], strides = [1, 1]} : vector<28x168xf32> to vector<28x84xf32>
    %43 = arith.maximumf %41, %42 : vector<28x84xf32>
    %c0_41 = arith.constant 0 : index
    %c0_42 = arith.constant 0 : index
    %44 = vector.load %arg5[%c0_41, %c0_42] : memref<28x28xf32, #tpu.memory_space<vmem>>, vector<28x28xf32>
    %cst_43 = arith.constant dense<0.000000e+00> : vector<28x84xf32>
    %45 = tpu.matmul %44, %43, %cst_43 {dimension_numbers = #tpu.dot_dimension_numbers<[1], [0], [0], [1], [0, 0, 1, 1], [], []>} : vector<28x28xf32>, vector<28x84xf32>, vector<28x84xf32> -> vector<28x84xf32>
    %46 = vector.extract_strided_slice %45 {offsets = [0, 0], sizes = [14, 84], strides = [1, 1]} : vector<28x84xf32> to vector<14x84xf32>
    %47 = vector.extract_strided_slice %45 {offsets = [14, 0], sizes = [14, 84], strides = [1, 1]} : vector<28x84xf32> to vector<14x84xf32>
    %48 = arith.maximumf %46, %47 : vector<14x84xf32>
    %49 = vector.extract_strided_slice %48 {offsets = [0, 0], sizes = [10, 84], strides = [1, 1]} : vector<14x84xf32> to vector<10x84xf32>
    %c0_44 = arith.constant 0 : index
    %c0_45 = arith.constant 0 : index
    %c0_46 = arith.constant 0 : index
    %50 = vector.load %arg6[%c0_44, %c0_45, %c0_46] : memref<5x84x160xf32, #tpu.memory_space<vmem>>, vector<1x84x160xf32>
    %51 = vector.shape_cast %50 : vector<1x84x160xf32> to vector<84x160xf32>
    %cst_47 = arith.constant dense<0.000000e+00> : vector<10x160xf32>
    %52 = tpu.matmul %49, %51, %cst_47 {dimension_numbers = #tpu.dot_dimension_numbers<[1], [0], [0], [1], [0, 0, 1, 1], [], []>} : vector<10x84xf32>, vector<84x160xf32>, vector<10x160xf32> -> vector<10x160xf32>
    %53 = vector.extract_strided_slice %48 {offsets = [1, 0], sizes = [10, 84], strides = [1, 1]} : vector<14x84xf32> to vector<10x84xf32>
    %c1_48 = arith.constant 1 : index
    %c0_49 = arith.constant 0 : index
    %c0_50 = arith.constant 0 : index
    %54 = vector.load %arg6[%c1_48, %c0_49, %c0_50] : memref<5x84x160xf32, #tpu.memory_space<vmem>>, vector<1x84x160xf32>
    %55 = vector.shape_cast %54 : vector<1x84x160xf32> to vector<84x160xf32>
    %cst_51 = arith.constant dense<0.000000e+00> : vector<10x160xf32>
    %56 = tpu.matmul %53, %55, %cst_51 {dimension_numbers = #tpu.dot_dimension_numbers<[1], [0], [0], [1], [0, 0, 1, 1], [], []>} : vector<10x84xf32>, vector<84x160xf32>, vector<10x160xf32> -> vector<10x160xf32>
    %57 = arith.addf %52, %56 : vector<10x160xf32>
    %58 = vector.extract_strided_slice %48 {offsets = [2, 0], sizes = [10, 84], strides = [1, 1]} : vector<14x84xf32> to vector<10x84xf32>
    %c2_52 = arith.constant 2 : index
    %c0_53 = arith.constant 0 : index
    %c0_54 = arith.constant 0 : index
    %59 = vector.load %arg6[%c2_52, %c0_53, %c0_54] : memref<5x84x160xf32, #tpu.memory_space<vmem>>, vector<1x84x160xf32>
    %60 = vector.shape_cast %59 : vector<1x84x160xf32> to vector<84x160xf32>
    %cst_55 = arith.constant dense<0.000000e+00> : vector<10x160xf32>
    %61 = tpu.matmul %58, %60, %cst_55 {dimension_numbers = #tpu.dot_dimension_numbers<[1], [0], [0], [1], [0, 0, 1, 1], [], []>} : vector<10x84xf32>, vector<84x160xf32>, vector<10x160xf32> -> vector<10x160xf32>
    %62 = arith.addf %57, %61 : vector<10x160xf32>
    %63 = vector.extract_strided_slice %48 {offsets = [3, 0], sizes = [10, 84], strides = [1, 1]} : vector<14x84xf32> to vector<10x84xf32>
    %c3_56 = arith.constant 3 : index
    %c0_57 = arith.constant 0 : index
    %c0_58 = arith.constant 0 : index
    %64 = vector.load %arg6[%c3_56, %c0_57, %c0_58] : memref<5x84x160xf32, #tpu.memory_space<vmem>>, vector<1x84x160xf32>
    %65 = vector.shape_cast %64 : vector<1x84x160xf32> to vector<84x160xf32>
    %cst_59 = arith.constant dense<0.000000e+00> : vector<10x160xf32>
    %66 = tpu.matmul %63, %65, %cst_59 {dimension_numbers = #tpu.dot_dimension_numbers<[1], [0], [0], [1], [0, 0, 1, 1], [], []>} : vector<10x84xf32>, vector<84x160xf32>, vector<10x160xf32> -> vector<10x160xf32>
    %67 = arith.addf %62, %66 : vector<10x160xf32>
    %68 = vector.extract_strided_slice %48 {offsets = [4, 0], sizes = [10, 84], strides = [1, 1]} : vector<14x84xf32> to vector<10x84xf32>
    %c4_60 = arith.constant 4 : index
    %c0_61 = arith.constant 0 : index
    %c0_62 = arith.constant 0 : index
    %69 = vector.load %arg6[%c4_60, %c0_61, %c0_62] : memref<5x84x160xf32, #tpu.memory_space<vmem>>, vector<1x84x160xf32>
    %70 = vector.shape_cast %69 : vector<1x84x160xf32> to vector<84x160xf32>
    %cst_63 = arith.constant dense<0.000000e+00> : vector<10x160xf32>
    %71 = tpu.matmul %68, %70, %cst_63 {dimension_numbers = #tpu.dot_dimension_numbers<[1], [0], [0], [1], [0, 0, 1, 1], [], []>} : vector<10x84xf32>, vector<84x160xf32>, vector<10x160xf32> -> vector<10x160xf32>
    %72 = arith.addf %67, %71 : vector<10x160xf32>
    %c0_64 = arith.constant 0 : index
    %c0_65 = arith.constant 0 : index
    %73 = vector.load %arg7[%c0_64, %c0_65] : memref<1x160xf32, #tpu.memory_space<vmem>>, vector<1x160xf32>
    %74 = vector.broadcast %73 : vector<1x160xf32> to vector<10x160xf32>
    %75 = arith.addf %72, %74 : vector<10x160xf32>
    %cst_66 = arith.constant 0.000000e+00 : f32
    %76 = vector.broadcast %cst_66 : f32 to vector<10x160xf32>
    %77 = arith.maximumf %75, %76 : vector<10x160xf32>
    %78 = vector.extract_strided_slice %77 {offsets = [0, 0], sizes = [10, 80], strides = [1, 1]} : vector<10x160xf32> to vector<10x80xf32>
    %79 = vector.extract_strided_slice %77 {offsets = [0, 80], sizes = [10, 80], strides = [1, 1]} : vector<10x160xf32> to vector<10x80xf32>
    %80 = arith.maximumf %78, %79 : vector<10x80xf32>
    %c0_67 = arith.constant 0 : index
    %c0_68 = arith.constant 0 : index
    %81 = vector.load %arg8[%c0_67, %c0_68] : memref<10x10xf32, #tpu.memory_space<vmem>>, vector<10x10xf32>
    %cst_69 = arith.constant dense<0.000000e+00> : vector<10x80xf32>
    %82 = tpu.matmul %81, %80, %cst_69 {dimension_numbers = #tpu.dot_dimension_numbers<[1], [0], [0], [1], [0, 0, 1, 1], [], []>} : vector<10x10xf32>, vector<10x80xf32>, vector<10x80xf32> -> vector<10x80xf32>
    %83 = vector.extract_strided_slice %82 {offsets = [0, 0], sizes = [5, 80], strides = [1, 1]} : vector<10x80xf32> to vector<5x80xf32>
    %84 = vector.extract_strided_slice %82 {offsets = [5, 0], sizes = [5, 80], strides = [1, 1]} : vector<10x80xf32> to vector<5x80xf32>
    %85 = arith.maximumf %83, %84 : vector<5x80xf32>
    %86 = vector.extract_strided_slice %85 {offsets = [0, 0], sizes = [1, 80], strides = [1, 1]} : vector<5x80xf32> to vector<1x80xf32>
    %c0_70 = arith.constant 0 : index
    %c0_71 = arith.constant 0 : index
    %c0_72 = arith.constant 0 : index
    %87 = vector.load %arg9[%c0_70, %c0_71, %c0_72] : memref<5x80x120xf32, #tpu.memory_space<vmem>>, vector<1x80x120xf32>
    %88 = vector.shape_cast %87 : vector<1x80x120xf32> to vector<80x120xf32>
    %cst_73 = arith.constant dense<0.000000e+00> : vector<1x120xf32>
    %89 = tpu.matmul %86, %88, %cst_73 {dimension_numbers = #tpu.dot_dimension_numbers<[1], [0], [0], [1], [0, 0, 1, 1], [], []>} : vector<1x80xf32>, vector<80x120xf32>, vector<1x120xf32> -> vector<1x120xf32>
    %90 = vector.extract_strided_slice %85 {offsets = [1, 0], sizes = [1, 80], strides = [1, 1]} : vector<5x80xf32> to vector<1x80xf32>
    %c1_74 = arith.constant 1 : index
    %c0_75 = arith.constant 0 : index
    %c0_76 = arith.constant 0 : index
    %91 = vector.load %arg9[%c1_74, %c0_75, %c0_76] : memref<5x80x120xf32, #tpu.memory_space<vmem>>, vector<1x80x120xf32>
    %92 = vector.shape_cast %91 : vector<1x80x120xf32> to vector<80x120xf32>
    %cst_77 = arith.constant dense<0.000000e+00> : vector<1x120xf32>
    %93 = tpu.matmul %90, %92, %cst_77 {dimension_numbers = #tpu.dot_dimension_numbers<[1], [0], [0], [1], [0, 0, 1, 1], [], []>} : vector<1x80xf32>, vector<80x120xf32>, vector<1x120xf32> -> vector<1x120xf32>
    %94 = arith.addf %89, %93 : vector<1x120xf32>
    %95 = vector.extract_strided_slice %85 {offsets = [2, 0], sizes = [1, 80], strides = [1, 1]} : vector<5x80xf32> to vector<1x80xf32>
    %c2_78 = arith.constant 2 : index
    %c0_79 = arith.constant 0 : index
    %c0_80 = arith.constant 0 : index
    %96 = vector.load %arg9[%c2_78, %c0_79, %c0_80] : memref<5x80x120xf32, #tpu.memory_space<vmem>>, vector<1x80x120xf32>
    %97 = vector.shape_cast %96 : vector<1x80x120xf32> to vector<80x120xf32>
    %cst_81 = arith.constant dense<0.000000e+00> : vector<1x120xf32>
    %98 = tpu.matmul %95, %97, %cst_81 {dimension_numbers = #tpu.dot_dimension_numbers<[1], [0], [0], [1], [0, 0, 1, 1], [], []>} : vector<1x80xf32>, vector<80x120xf32>, vector<1x120xf32> -> vector<1x120xf32>
    %99 = arith.addf %94, %98 : vector<1x120xf32>
    %100 = vector.extract_strided_slice %85 {offsets = [3, 0], sizes = [1, 80], strides = [1, 1]} : vector<5x80xf32> to vector<1x80xf32>
    %c3_82 = arith.constant 3 : index
    %c0_83 = arith.constant 0 : index
    %c0_84 = arith.constant 0 : index
    %101 = vector.load %arg9[%c3_82, %c0_83, %c0_84] : memref<5x80x120xf32, #tpu.memory_space<vmem>>, vector<1x80x120xf32>
    %102 = vector.shape_cast %101 : vector<1x80x120xf32> to vector<80x120xf32>
    %cst_85 = arith.constant dense<0.000000e+00> : vector<1x120xf32>
    %103 = tpu.matmul %100, %102, %cst_85 {dimension_numbers = #tpu.dot_dimension_numbers<[1], [0], [0], [1], [0, 0, 1, 1], [], []>} : vector<1x80xf32>, vector<80x120xf32>, vector<1x120xf32> -> vector<1x120xf32>
    %104 = arith.addf %99, %103 : vector<1x120xf32>
    %105 = vector.extract_strided_slice %85 {offsets = [4, 0], sizes = [1, 80], strides = [1, 1]} : vector<5x80xf32> to vector<1x80xf32>
    %c4_86 = arith.constant 4 : index
    %c0_87 = arith.constant 0 : index
    %c0_88 = arith.constant 0 : index
    %106 = vector.load %arg9[%c4_86, %c0_87, %c0_88] : memref<5x80x120xf32, #tpu.memory_space<vmem>>, vector<1x80x120xf32>
    %107 = vector.shape_cast %106 : vector<1x80x120xf32> to vector<80x120xf32>
    %cst_89 = arith.constant dense<0.000000e+00> : vector<1x120xf32>
    %108 = tpu.matmul %105, %107, %cst_89 {dimension_numbers = #tpu.dot_dimension_numbers<[1], [0], [0], [1], [0, 0, 1, 1], [], []>} : vector<1x80xf32>, vector<80x120xf32>, vector<1x120xf32> -> vector<1x120xf32>
    %109 = arith.addf %104, %108 : vector<1x120xf32>
    %c0_90 = arith.constant 0 : index
    %c0_91 = arith.constant 0 : index
    %110 = vector.load %arg10[%c0_90, %c0_91] : memref<1x120xf32, #tpu.memory_space<vmem>>, vector<1x120xf32>
    %111 = arith.addf %109, %110 : vector<1x120xf32>
    %cst_92 = arith.constant 0.000000e+00 : f32
    %112 = vector.broadcast %cst_92 : f32 to vector<1x120xf32>
    %113 = arith.maximumf %111, %112 : vector<1x120xf32>
    %c0_93 = arith.constant 0 : index
    %c0_94 = arith.constant 0 : index
    %114 = vector.load %arg11[%c0_93, %c0_94] : memref<120x84xf32, #tpu.memory_space<vmem>>, vector<120x84xf32>
    %cst_95 = arith.constant dense<0.000000e+00> : vector<1x84xf32>
    %115 = tpu.matmul %113, %114, %cst_95 {dimension_numbers = #tpu.dot_dimension_numbers<[1], [0], [0], [1], [0, 0, 1, 1], [], []>} : vector<1x120xf32>, vector<120x84xf32>, vector<1x84xf32> -> vector<1x84xf32>
    %c0_96 = arith.constant 0 : index
    %c0_97 = arith.constant 0 : index
    %116 = vector.load %arg12[%c0_96, %c0_97] : memref<1x84xf32, #tpu.memory_space<vmem>>, vector<1x84xf32>
    %117 = arith.addf %115, %116 : vector<1x84xf32>
    %cst_98 = arith.constant 0.000000e+00 : f32
    %118 = vector.broadcast %cst_98 : f32 to vector<1x84xf32>
    %119 = arith.maximumf %117, %118 : vector<1x84xf32>
    %c0_99 = arith.constant 0 : index
    %c0_100 = arith.constant 0 : index
    %120 = vector.load %arg13[%c0_99, %c0_100] : memref<84x10xf32, #tpu.memory_space<vmem>>, vector<84x10xf32>
    %cst_101 = arith.constant dense<0.000000e+00> : vector<1x10xf32>
    %121 = tpu.matmul %119, %120, %cst_101 {dimension_numbers = #tpu.dot_dimension_numbers<[1], [0], [0], [1], [0, 0, 1, 1], [], []>} : vector<1x84xf32>, vector<84x10xf32>, vector<1x10xf32> -> vector<1x10xf32>
    %c0_102 = arith.constant 0 : index
    %c0_103 = arith.constant 0 : index
    %122 = vector.load %arg14[%c0_102, %c0_103] : memref<1x10xf32, #tpu.memory_space<vmem>>, vector<1x10xf32>
    %123 = arith.addf %121, %122 : vector<1x10xf32>
    %c0_104 = arith.constant 0 : index
    %c0_105 = arith.constant 0 : index
    %c0_106 = arith.constant 0 : index
    %124 = vector.load %arg15[%c0_104, %c0_105, %c0_106] : memref<1x1x10xf32, #tpu.memory_space<vmem>>, vector<1x1x10xf32>
    %125 = vector.shape_cast %124 : vector<1x1x10xf32> to vector<1x10xf32>
    %126 = vector.shape_cast %123 : vector<1x10xf32> to vector<1x1x10xf32>
    tpu.vector_store %arg15[%c0_104, %c0_105, %c0_106], %126 {strides = array<i32>} : memref<1x1x10xf32, #tpu.memory_space<vmem>>, vector<1x1x10xf32>,
    return
  }
  func.func @transform_0(%arg0: i32) -> (i32, i32, i32, i32) {
    %c0_i32 = arith.constant 0 : i32
    %c0_i32_0 = arith.constant 0 : i32
    %c0_i32_1 = arith.constant 0 : i32
    %c0_i32_2 = arith.constant 0 : i32
    return %arg0, %c0_i32, %c0_i32_0, %c0_i32_1 : i32, i32, i32, i32
  }
  func.func @transform_1(%arg0: i32) -> (i32, i32, i32) {
    %c0_i32 = arith.constant 0 : i32
    %c0_i32_0 = arith.constant 0 : i32
    %c0_i32_1 = arith.constant 0 : i32
    %c0_i32_2 = arith.constant 0 : i32
    return %c0_i32, %c0_i32_0, %c0_i32_1 : i32, i32, i32
  }
  func.func @transform_2(%arg0: i32) -> (i32, i32, i32) {
    %c0_i32 = arith.constant 0 : i32
    %c0_i32_0 = arith.constant 0 : i32
    %c0_i32_1 = arith.constant 0 : i32
    %c0_i32_2 = arith.constant 0 : i32
    return %c0_i32, %c0_i32_0, %c0_i32_1 : i32, i32, i32
  }
  func.func @transform_3(%arg0: i32) -> (i32, i32) {
    %c0_i32 = arith.constant 0 : i32
    %c0_i32_0 = arith.constant 0 : i32
    %c0_i32_1 = arith.constant 0 : i32
    return %c0_i32, %c0_i32_0 : i32, i32
  }
  func.func @transform_4(%arg0: i32) -> (i32, i32) {
    %c0_i32 = arith.constant 0 : i32
    %c0_i32_0 = arith.constant 0 : i32
    %c0_i32_1 = arith.constant 0 : i32
    return %c0_i32, %c0_i32_0 : i32, i32
  }
  func.func @transform_5(%arg0: i32) -> (i32, i32, i32) {
    %c0_i32 = arith.constant 0 : i32
    %c0_i32_0 = arith.constant 0 : i32
    %c0_i32_1 = arith.constant 0 : i32
    %c0_i32_2 = arith.constant 0 : i32
    return %c0_i32, %c0_i32_0, %c0_i32_1 : i32, i32, i32
  }
  func.func @transform_6(%arg0: i32) -> (i32, i32) {
    %c0_i32 = arith.constant 0 : i32
    %c0_i32_0 = arith.constant 0 : i32
    %c0_i32_1 = arith.constant 0 : i32
    return %c0_i32, %c0_i32_0 : i32, i32
  }
  func.func @transform_7(%arg0: i32) -> (i32, i32) {
    %c0_i32 = arith.constant 0 : i32
    %c0_i32_0 = arith.constant 0 : i32
    %c0_i32_1 = arith.constant 0 : i32
    return %c0_i32, %c0_i32_0 : i32, i32
  }
  func.func @transform_8(%arg0: i32) -> (i32, i32, i32) {
    %c0_i32 = arith.constant 0 : i32
    %c0_i32_0 = arith.constant 0 : i32
    %c0_i32_1 = arith.constant 0 : i32
    %c0_i32_2 = arith.constant 0 : i32
    return %c0_i32, %c0_i32_0, %c0_i32_1 : i32, i32, i32
  }
  func.func @transform_9(%arg0: i32) -> (i32, i32) {
    %c0_i32 = arith.constant 0 : i32
    %c0_i32_0 = arith.constant 0 : i32
    %c0_i32_1 = arith.constant 0 : i32
    return %c0_i32, %c0_i32_0 : i32, i32
  }
  func.func @transform_10(%arg0: i32) -> (i32, i32) {
    %c0_i32 = arith.constant 0 : i32
    %c0_i32_0 = arith.constant 0 : i32
    %c0_i32_1 = arith.constant 0 : i32
    return %c0_i32, %c0_i32_0 : i32, i32
  }
  func.func @transform_11(%arg0: i32) -> (i32, i32) {
    %c0_i32 = arith.constant 0 : i32
    %c0_i32_0 = arith.constant 0 : i32
    %c0_i32_1 = arith.constant 0 : i32
    return %c0_i32, %c0_i32_0 : i32, i32
  }
  func.func @transform_12(%arg0: i32) -> (i32, i32) {
    %c0_i32 = arith.constant 0 : i32
    %c0_i32_0 = arith.constant 0 : i32
    %c0_i32_1 = arith.constant 0 : i32
    return %c0_i32, %c0_i32_0 : i32, i32
  }
  func.func @transform_13(%arg0: i32) -> (i32, i32) {
    %c0_i32 = arith.constant 0 : i32
    %c0_i32_0 = arith.constant 0 : i32
    %c0_i32_1 = arith.constant 0 : i32
    return %c0_i32, %c0_i32_0 : i32, i32
  }
  func.func @transform_14(%arg0: i32) -> (i32, i32, i32) {
    %c0_i32 = arith.constant 0 : i32
    %c0_i32_0 = arith.constant 0 : i32
    %c0_i32_1 = arith.constant 0 : i32
    return %arg0, %c0_i32, %c0_i32_0 : i32, i32, i32
  }
}

</mosaic_0001>

<bundles_post_ra>
// kernel: lenet5_pallas.1
= control target key start
LH: loop header
LB: loop body
LE: loop exit
PB: predicated region body
PF: predicated region fallthrough
CT: control target
= control target key end

     0   :  { %19 = vsyncpa [#allocation3], 0  ;;  %s5526_s0 = inlined_call_operand.vmem [shape: f32[2,1,28,28], index: 0, kind: input, shape index: {}]   ;;  %s5527_s1 = inlined_call_operand.vmem [shape: f32[5,28,168], index: 1, kind: input, shape index: {}]   ;;  %s5528_s2 = inlined_call_operand.vmem [shape: f32[5,28,28], index: 2, kind: input, shape index: {}]   ;;  %s5529_s3 = inlined_call_operand.vmem [shape: f32[1,168], index: 3, kind: input, shape index: {}]   ;;  %s5530_s4 = inlined_call_operand.vmem [shape: f32[28,28], index: 4, kind: input, shape index: {}]   ;;  %s5531_s5 = inlined_call_operand.vmem [shape: f32[5,84,160], index: 5, kind: input, shape index: {}]   ;;  %s5532_s6 = inlined_call_operand.vmem [shape: f32[1,160], index: 6, kind: input, shape index: {}]   ;;  %s5533_s7 = inlined_call_operand.vmem [shape: f32[10,10], index: 7, kind: input, shape index: {}]   ;;  %s5534_s8 = inlined_call_operand.vmem [shape: f32[5,80,120], index: 8, kind: input, shape index: {}]   ;;  %s5535_s9 = inlined_call_operand.vmem [shape: f32[1,120], index: 9, kind: input, shape index: {}]   ;;  %s5536_s10 = inlined_call_operand.vmem [shape: f32[120,84], index: 10, kind: input, shape index: {}]   ;;  %s5537_s11 = inlined_call_operand.vmem [shape: f32[1,84], index: 11, kind: input, shape index: {}]   ;;  %s5538_s12 = inlined_call_operand.vmem [shape: f32[84,10], index: 12, kind: input, shape index: {}]   ;;  %s5539_s13 = inlined_call_operand.vmem [shape: f32[1,10], index: 13, kind: input, shape index: {}]   ;;  %s5540_s14 = inlined_call_operand.hbm [shape: f32[2,1,10], index: 14, kind: output, shape index: {}]  }
   0x1   :  { %21 = vsyncpa [#allocation3 + $0x1], 0  ;;  %s4326_s29 = smov 0   ;;  %s4328_s30 = smov 0  }
   0x2   :  { %s4330_s15 = smov 0   ;;  %s4332_s16 = smov 0  }
   0x3 LB: > { %5546 = sst [smem:[#allocation5_spill]] %s4230_s29  ;;  %s4347_s17 = sadd.s32 4294967295, %s4242_s16   ;;  %s4242_s16 = sphi %s4332_s16, %s5557_s16   ;;  %s4238_s15 = sphi %s4330_s15, %s5559_s15   ;;  %s4234_s30 = sphi %s4328_s30, %s5561_s30   ;;  %s4230_s29 = sphi %s4326_s29, %s5560_s29  }
   0x4   : > { %5547 = sst [smem:[#allocation6_spill]] %s4238_s15  ;;  %s3155_s18 = sadd.s32 4294967294, %s4242_s16  }
   0x5   : > { %s4351_s19 = sadd.s32 1, %s4242_s16   ;;  %s333_s20 = sadd.s32 1, %s4238_s15 }
   0x6   : > { %5548 = sst [smem:[#allocation7_spill]] %s4351_s19  ;;  %s330_s21 = ssub.s32 %s4242_s16, %s4351_s19 }
   0x7   : > { %p343_p0 = scmp.ne.s32.totalorder %s4238_s15, %s4234_s30  ;;  %p331_p1 = scmp.eq.s32.totalorder %s330_s21, 0 }
   0x8   : > { %p344_p2 = scmp.eq.s32.totalorder %s4347_s17, 1  ;;  %p349_p3 = scmp.ne.s32.totalorder %s4234_s30, %s4230_s29 }
   0x9   : > { %p350_p4 = scmp.eq.s32.totalorder %s3155_s18, 1  ;;  %p3158_p7 = scmp.ge.s32.totalorder %s4242_s16, 1 }
   0xa   : > { %s4362_s22 = scalar_select %p331_p1, %s4238_s15, %s333_s20  }
   0xb   : > { %p4364_p5 = por %p344_p2, %p343_p0  ;;  %p4368_p6 = por %p350_p4, %p349_p3 }
   0xc   : > { %5549 = sst [smem:[#allocation8_spill]] %s4362_s22  ;;  %p415_p8 = scmp.lt.s32.totalorder %s4242_s16, 3 }
   0xd   : > { %s5551_s24 = scalar_select %p4368_p6, 1, 0 }
   0xe   : > { %p416_p9 = pnand %p3158_p7, %p415_p8 }
   0xf   : > { %5552 = sst [smem:[#allocation9_spill]] %s5551_s24  ;;  %v470_v0 = vld [vmem:[%s5527_s1 + $0x8] sm:$0xff] (!%p416_p9)  ;;  %v472_v1 = vld [vmem:[%s5527_s1 + $0x18] sm:$0xff] (!%p416_p9)  ;;  %v469_v2 = vld [vmem:[%s5527_s1] sm:$0xff] (!%p416_p9)  ;;  %vm490_vm0 = vcmask (!%p416_p9), 1043456   ;;  %v4244_v7 = vmov (!%p416_p9), 0.0  }
  0x10   : > { %419 = sbr.rel (%p416_p9) target bundleno = 2298 (0x8fa), region = 76  ;;  %v3726_v3 = vpack.c.bf16 (!%p416_p9), %v472_v1, %v470_v0  ;;  %v471_v4 = vld [vmem:[%s5527_s1 + $0x10] sm:$0xff] (!%p416_p9)  ;;  %v474_v5 = vld [vmem:[%s5527_s1 + $0x28] sm:$0xff] (!%p416_p9)  ;;  %v476_v6 = vld [vmem:[%s5527_s1 + $0x38] sm:$0xf] (!%p416_p9)  ;;  %561 = vmatprep.mubr.f32.mxu0 (!%p416_p9), %v4244_v7  ;;  %p460_p10 = scmp.lt.s32.totalorder (!%p416_p9), %s4347_s17, 1  ;;  %681 = vmatprep.mubr.f32.mxu1 (!%p416_p9), %v4244_v7 }
  0x11   : > { %v3728_v8 = vpack.c.bf16 (!%p416_p9), %v471_v4, %v469_v2  ;;  %v3730_v9 = vpack.c.bf16 (!%p416_p9), %v476_v6, %v474_v5  ;;  %vm4245_vm1 = vmmov (!%p416_p9), 1   ;;  %v473_v11 = vld [vmem:[%s5527_s1 + $0x20] sm:$0xff] (!%p416_p9)  ;;  %v475_v12 = vld [vmem:[%s5527_s1 + $0x30] sm:$0xf] (!%p416_p9)  ;;  %v3168_v13 = vld [vmem:[%s5527_s1 + $0x48] sm:$0xff] (!%p416_p9)  ;;  %vm477_vm3 = vcmask (!%p416_p9), 228352  }
  0x12   : > { %vm4397_vm2 = vmpackc.low (!%p416_p9), %vm490_vm0, %vm4245_vm1  ;;  %3727 = vmatprep.subr.bf16.mxu0 (!%p416_p9), %v3726_v3  ;;  %v3170_v14 = vld [vmem:[%s5527_s1 + $0x58] sm:$0xff] (!%p416_p9)  ;;  %v3167_v15 = vld [vmem:[%s5527_s1 + $0x40] sm:$0xff] (!%p416_p9)  ;;  %v3733_v16 = vpack.c.bf16 (!%p416_p9), %v475_v12, %v473_v11  ;;  %s4246_s25 = smov (!%p416_p9), 44   ;;  %vm1637_vm4 = vcmask (!%p416_p9), 359424   ;;  %vm1757_vm5 = vcmask (!%p416_p9), 1041408   ;;  %vm1814_vm6 = vcmask (!%p416_p9), 1046528  }
  0x13   : > { %3729 = vmatpush1.bf16.msra.mxu0 (!%p416_p9), %v3728_v8  ;;  %v3736_v17 = vpack.c.bf16 (!%p416_p9), %v3170_v14, %v3168_v13  ;;  %v3169_v18 = vld [vmem:[%s5527_s1 + $0x50] sm:$0xff] (!%p416_p9)  ;;  %v3172_v19 = vld [vmem:[%s5527_s1 + $0x68] sm:$0xff] (!%p416_p9)  ;;  %v3174_v20 = vld [vmem:[%s5527_s1 + $0x78] sm:$0xf] (!%p416_p9)  ;;  %vm1818_vm7 = vcmask (!%p416_p9), 687104   ;;  %vm2016_vm8 = vcmask (!%p416_p9), 1045504  }
  0x14   : > { %3732 = vmatprep.subr.msk.bf16.mxu0 (!%p416_p9), %vm4397_vm2, %v3730_v9  ;;  %v3738_v21 = vpack.c.bf16 (!%p416_p9), %v3169_v18, %v3167_v15  ;;  %v3740_v22 = vpack.c.bf16 (!%p416_p9), %v3174_v20, %v3172_v19  ;;  %v3171_v23 = vld [vmem:[%s5527_s1 + $0x60] sm:$0xff] (!%p416_p9)  ;;  %v3173_v24 = vld [vmem:[%s5527_s1 + $0x70] sm:$0xf] (!%p416_p9)  ;;  %v3198_v25 = vld [vmem:[%s5527_s1 + $0x88] sm:$0xff] (!%p416_p9)  ;;  %vm2134_vm9 = vcmask (!%p416_p9), 1044480   ;;  %vm2387_vm10 = vcmask (!%p416_p9), 80896  }
  0x15   : > { %4053 = vmatprep.subr.bf16.mxu1 (!%p416_p9), %v3736_v17  ;;  %v3200_v26 = vld [vmem:[%s5527_s1 + $0x98] sm:$0xff] (!%p416_p9)  ;;  %v3743_v27 = vpack.c.bf16 (!%p416_p9), %v3173_v24, %v3171_v23  ;;  %v3197_v30 = vld [vmem:[%s5527_s1 + $0x80] sm:$0xff] (!%p416_p9)  ;;  %v3199_v31 = vld [vmem:[%s5527_s1 + $0x90] sm:$0xff] (!%p416_p9)  ;;  %s4247_s18 = smov (!%p416_p9), 48   ;;  %vm2378_vm11 = vcmask (!%p416_p9), 392192   ;;  %vm4249_vm13 = vmmov (!%p416_p9), 0  }
  0x16   : > { %4055 = vmatpush1.bf16.msra.mxu1 (!%p416_p9), %v3738_v21  ;;  %v3766_v29 = vpack.c.bf16 (!%p416_p9), %v3200_v26, %v3198_v25  ;;  %v3202_v32 = vld [vmem:[%s5527_s1 + $0xa8] sm:$0xff] (!%p416_p9)  ;;  %v3204_v33 = vld [vmem:[%s5527_s1 + $0xb8] sm:$0xf] (!%p416_p9)  ;;  %v3768_v36 = vpack.c.bf16 (!%p416_p9), %v3199_v31, %v3197_v30  ;;  %v3201_v38 = vld [vmem:[%s5527_s1 + $0xa0] sm:$0xff] (!%p416_p9)  ;;  %vm2474_vm14 = vcmask (!%p416_p9), 1042432   ;;  %vm2503_vm15 = vcmask (!%p416_p9), 654336  }
  0x17   : > { %s461_s28 = scalar_select %p460_p10, %s4347_s17, 1  ;;  %3735 = vmatpush1.bf16.msk.msra.mxu0 %vm4397_vm2, %v3733_v16  ;;  %4054 = vmatprep.subr.msk.bf16.mxu1 %vm4397_vm2, %v3740_v22  ;;  %v3770_v37 = vpack.c.bf16 %v3204_v33, %v3202_v32  ;;  %v3203_v39 = vld [vmem:[%s5527_s1 + $0xb0] sm:$0xf]  ;;  %v3222_v40 = vld [vmem:[%s5527_s1 + $0xc8] sm:$0xff]  ;;  %v3224_v41 = vld [vmem:[%s5527_s1 + $0xd8] sm:$0xff] }
  0x18   : > { %3737 = vmatprep.subr.bf16.mxu0 %v3736_v17  ;;  %v3773_v43 = vpack.c.bf16 %v3203_v39, %v3201_v38  ;;  %v3786_v44 = vpack.c.bf16 %v3224_v41, %v3222_v40  ;;  %v3221_v45 = vld [vmem:[%s5527_s1 + $0xc0] sm:$0xff]  ;;  %v3223_v46 = vld [vmem:[%s5527_s1 + $0xd0] sm:$0xff]  ;;  %v3226_v47 = vld [vmem:[%s5527_s1 + $0xe8] sm:$0xff]  ;;  %s3433_s29 = sshll.u32 %s4347_s17, 4  ;;  %s4250_s17 = smov [#allocation2]  }
  0x19   : > { %s3436_s24 = sshll.u32 %s461_s28, 5  ;;  %v3228_v48 = vld [vmem:[%s5527_s1 + $0xf8] sm:$0xf]  ;;  %v3788_v49 = vpack.c.bf16 %v3223_v46, %v3221_v45  ;;  %v3225_v51 = vld [vmem:[%s5527_s1 + $0xe0] sm:$0xff]  ;;  %v3227_v52 = vld [vmem:[%s5527_s1 + $0xf0] sm:$0xf]  ;;  %s5484_s22 = scalar_lea.hbm %s5540_s14, %s3433_s29 }
  0x1a   : > { %s4437_s27 = scalar_lea.vmem %s5526_s0, %s3436_s24  ;;  %4056 = vmatpush1.bf16.msk.msra.mxu1 %vm4397_vm2, %v3743_v27  ;;  %v3790_v50 = vpack.c.bf16 %v3228_v48, %v3226_v47  ;;  %v3246_v53 = vld [vmem:[%s5527_s1 + $0x108] sm:$0xff]  ;;  %v3248_v54 = vld [vmem:[%s5527_s1 + $0x118] sm:$0xff]  ;;  %v3793_v55 = vpack.c.bf16 %v3227_v52, %v3225_v51  ;;  %v3245_v57 = vld [vmem:[%s5527_s1 + $0x100] sm:$0xff]  ;;  %s458_s28 = sand.u32 1, %s4234_s30  }
  0x1b   : > { %v4448_v28 = vld [vmem:[%s4437_s27] sm:$0xff]  ;;  %v4470_v34 = vld [vmem:[%s4437_s27 + $0x8] sm:$0xff]  ;;  %v4473_v35 = vld [vmem:[%s4437_s27 + $0x10] sm:$0xff]  ;;  %3767 = vmatprep.subr.bf16.mxu1 %v3766_v29  ;;  %v3806_v56 = vpack.c.bf16 %v3248_v54, %v3246_v53  ;;  %s4184_s20 = sshll.u32 %s4250_s17, 4  ;;  %s4185_s20 = int_to_ptr.vmem [resolvable:$false] %s4184_s20 }
  0x1c   : > { %3163 = vmatmul.mubr.msk.f32.vlgmr.msra.gmra.mrb[0].mxu0 %vm477_vm3, %v4448_v28  ;;  %v4498_v42 = vld [vmem:[%s4437_s27 + $0x18] sm:$0xf]  ;;  %v3247_v58 = vld [vmem:[%s5527_s1 + $0x110] sm:$0xff]  ;;  %v3250_v59 = vld [vmem:[%s5527_s1 + $0x128] sm:$0xff]  ;;  %s4186_s24 = scalar_lea.vmem %s4185_s20, 32 }
  0x1d   : > { %567 = vmatprep.mubr.f32.mxu0 %v4244_v7  ;;  %3739 = vmatpush1.bf16.msra.mxu0 %v3738_v21  ;;  %v3252_v60 = vld [vmem:[%s5527_s1 + $0x138] sm:$0xf]  ;;  %v3808_v61 = vpack.c.bf16 %v3247_v58, %v3245_v57  ;;  %v3249_v63 = vld [vmem:[%s5527_s1 + $0x120] sm:$0xff]  ;;  %v3251_v0 = vld [vmem:[%s5527_s1 + $0x130] sm:$0xf] }
  0x1e   : > { %3742 = vmatprep.subr.msk.bf16.mxu0 %vm4397_vm2, %v3740_v22  ;;  %3179 = vmatmul.mubr.msk.f32.vlgmr.msra.gmra.mrb[0].mxu1 %vm477_vm3, %v4473_v35  ;;  %v3810_v62 = vpack.c.bf16 %v3252_v60, %v3250_v59  ;;  %v3813_v1 = vpack.c.bf16 %v3251_v0, %v3249_v63  ;;  %v3181_v40 = vld [vmem:[%s5528_s2 + $0x20] sm:$0xff]  ;;  %v3183_v48 = vld [vmem:[%s5528_s2 + $0x30] sm:$0xff]  ;;  %v3184_v51 = vld [vmem:[%s5528_s2 + $0x38] sm:$0xf] }
  0x1f   : > { %687 = vmatprep.mubr.f32.mxu1 %v4244_v7  ;;  %3769 = vmatpush1.bf16.msra.mxu1 %v3768_v36  ;;  %v587_v59 = vld [vmem:[%s5528_s2 + $0x8] sm:$0xff]  ;;  %v588_v0 = vld [vmem:[%s5528_s2 + $0x10] sm:$0xff]  ;;  %v3280_v10 = vld [vmem:[%s5531_s5 + $0xe0] sm:$0xff] }
  0x20   : > { %3164 = vmatmul.mubr.msk.f32.gmra.mrb[2].mxu0 %vm477_vm3, %v4470_v34  ;;  %3772 = vmatprep.subr.msk.bf16.mxu1 %vm4397_vm2, %v3770_v37  ;;  %vm3937_vm12 = vmpackc.low %vm1757_vm5, %vm4245_vm1  ;;  %vm2922_vm1 = vcmask 982016  }
  0x21   : > { %573 = vmatprep.mubr.f32.mxu0 %v4244_v7  ;;  %3745 = vmatpush1.bf16.msk.msra.mxu0 %vm4397_vm2, %v3743_v27 }
  0x22   : > { %3180 = vmatmul.mubr.msk.f32.gmra.mrb[2].mxu1 %vm477_vm3, %v4498_v42 }
  0x23   : > { %992 = vmatprep.mubr.f32.mxu1 %v4244_v7  ;;  %3775 = vmatpush1.bf16.msk.msra.mxu1 %vm4397_vm2, %v3773_v43  ;;  %v3182_v43 = vld [vmem:[%s5528_s2 + $0x28] sm:$0xff] }
  0x24   : > { %3165 = vmatmul.mubr.msk.f32.gmra.mrb[4].mxu0 %vm477_vm3, %v4473_v35  ;;  %3787 = vmatprep.subr.bf16.mxu1 %v3786_v44 }
  0x25   : > { %579 = vmatprep.mubr.f32.mxu0 %v4244_v7 }
  0x26   : > { %3207 = vmatmul.mubr.msk.f32.vlgmr.msra.gmra.mrb[4].mxu1 %vm477_vm3, %v4448_v28 }
  0x27   : > { %998 = vmatprep.mubr.f32.mxu1 %v4244_v7  ;;  %3789 = vmatpush1.bf16.msra.mxu1 %v3788_v49 }
  0x28   : > { %3166 = vmatmul.mubr.msk.f32.gmra.mrb[6].mxu0 %vm477_vm3, %v4498_v42  ;;  %3792 = vmatprep.subr.msk.bf16.mxu1 %vm4397_vm2, %v3790_v50 }
  0x29   : > { %669 = vmatprep.mubr.f32.mxu0 %v4244_v7 }
  0x2a   : > { %3208 = vmatmul.mubr.msk.f32.gmra.mrb[6].mxu1 %vm477_vm3, %v4470_v34 }
  0x2b   : > { %1004 = vmatprep.mubr.f32.mxu1 %v4244_v7  ;;  %3795 = vmatpush1.bf16.msk.msra.mxu1 %vm4397_vm2, %v3793_v55 }
  0x2c   : > { %3177 = vmatmul.mubr.msk.f32.vlgmr.msra.gmra.mrb[8].mxu0 %vm477_vm3, %v4448_v28  ;;  %3807 = vmatprep.subr.bf16.mxu1 %v3806_v56  ;;  %v586_v56 = vld [vmem:[%s5528_s2] sm:$0xff] }
  0x2d   : > { %675 = vmatprep.mubr.f32.mxu0 %v4244_v7 }
  0x2e   : > { %3209 = vmatmul.mubr.msk.f32.gmra.mrb[8].mxu1 %vm477_vm3, %v4473_v35 }
  0x2f   : > { %1010 = vmatprep.mubr.f32.mxu1 %v4244_v7 }
  0x30   : > { %3178 = vmatmul.mubr.msk.f32.gmra.mrb[10].mxu0 %vm477_vm3, %v4470_v34 }
  0x31   : > { %781 = vmatprep.mubr.f32.mxu0 %v4244_v7 }
  0x32   : > { %3210 = vmatmul.mubr.msk.f32.gmra.mrb[10].mxu1 %vm477_vm3, %v4498_v42 }
  0x33   : > { %1216 = vmatprep.mubr.f32.mxu1 %v4244_v7 }
  0x36   : > { %3231 = vmatmul.mubr.msk.f32.vlgmr.msra.gmra.mrb[12].mxu1 %vm477_vm3, %v4448_v28 }
  0x37   : > { %1222 = vmatprep.mubr.f32.mxu1 %v4244_v7  ;;  %3809 = vmatpush1.bf16.msra.mxu1 %v3808_v61 }
  0x38   : > { %3812 = vmatprep.subr.msk.bf16.mxu1 %vm4397_vm2, %v3810_v62 }
  0x3a   : > { %3232 = vmatmul.mubr.msk.f32.gmra.mrb[14].mxu1 %vm477_vm3, %v4470_v34 }
  0x3b   : > { %1228 = vmatprep.mubr.f32.mxu1 %v4244_v7  ;;  %3815 = vmatpush1.bf16.msk.msra.mxu1 %vm4397_vm2, %v3813_v1 }
  0x3e   : > { %3233 = vmatmul.mubr.msk.f32.gmra.mrb[16].mxu1 %vm477_vm3, %v4473_v35 }
  0x3f   : > { %1234 = vmatprep.mubr.f32.mxu1 %v4244_v7 }
  0x42   : > { %3234 = vmatmul.mubr.msk.f32.gmra.mrb[18].mxu1 %vm477_vm3, %v4498_v42 }
  0x43   : > { %1440 = vmatprep.mubr.f32.mxu1 %v4244_v7 }
  0x46   : > { %3255 = vmatmul.mubr.msk.f32.vlgmr.msra.gmra.mrb[20].mxu1 %vm477_vm3, %v4448_v28 }
  0x47   : > { %1446 = vmatprep.mubr.f32.mxu1 %v4244_v7 }
  0x4a   : > { %3256 = vmatmul.mubr.msk.f32.gmra.mrb[22].mxu1 %vm477_vm3, %v4470_v34 }
  0x4b   : > { %1452 = vmatprep.mubr.f32.mxu1 %v4244_v7 }
  0x4e   : > { %3257 = vmatmul.mubr.msk.f32.gmra.mrb[24].mxu1 %vm477_vm3, %v4473_v35 }
  0x4f   : > { %1458 = vmatprep.mubr.f32.mxu1 %v4244_v7 }
  0x52   : > { %3258 = vmatmul.mubr.msk.f32.gmra.mrb[26].mxu1 %vm477_vm3, %v4498_v42 }
  0xef   : > { %v563_v2 = vpop.f32.mrb[0].mxu0 }
  0xf0   : > { %v565_v3 = vpop.f32.mrb[1].mxu0 }
  0xf1   : > { %v683_v4 = vpop.f32.mrb[0].mxu1 }
  0xf2   : > { %v685_v6 = vpop.f32.mrb[1].mxu1 }
  0xf3   : > { %v569_v5 = vpop.f32.mrb[2].mxu0 }
  0xf4   : > { %v3758_v8 = vpack.c.bf16 %v569_v5, %v563_v2  ;;  %v571_v9 = vpop.f32.mrb[3].mxu0 }
  0xf5   : > { %v3756_v11 = vpack.c.bf16 %v571_v9, %v565_v3  ;;  %v689_v12 = vpop.f32.mrb[2].mxu1  ;;  %v589_v3 = vld [vmem:[%s5528_s2 + $0x18] sm:$0xf]  ;;  %v3211_v9 = vld [vmem:[%s5528_s2 + $0x40] sm:$0xff] }
  0xf6   : > { %v3753_v14 = vpack.c.bf16 %v689_v12, %v683_v4  ;;  %v691_v15 = vpop.f32.mrb[3].mxu1  ;;  %v3213_v12 = vld [vmem:[%s5528_s2 + $0x50] sm:$0xff] }
  0xf7   : > { %v575_v13 = vpop.f32.mrb[4].mxu0  ;;  %v3750_v17 = vpack.c.bf16 %v691_v15, %v685_v6  ;;  %v3236_v15 = vld [vmem:[%s5528_s2 + $0x68] sm:$0xff] }
  0xf8   : > { %v577_v16 = vpop.f32.mrb[5].mxu0 }
  0xf9   : > { %v994_v21 = vpop.f32.mrb[4].mxu1 }
  0xfa   : > { %v996_v23 = vpop.f32.mrb[5].mxu1 }
  0xfb   : > { %v581_v18 = vpop.f32.mrb[6].mxu0 }
  0xfc   : > { %v3763_v19 = vpack.c.bf16 %v581_v18, %v575_v13  ;;  %v583_v20 = vpop.f32.mrb[7].mxu0  ;;  %v3214_v13 = vld [vmem:[%s5528_s2 + $0x58] sm:$0xf]  ;;  %v3259_v18 = vld [vmem:[%s5528_s2 + $0x80] sm:$0xff] }
  0xfd   : > { %v3760_v22 = vpack.c.bf16 %v583_v20, %v577_v16  ;;  %v1000_v26 = vpop.f32.mrb[6].mxu1  ;;  %v3237_v16 = vld [vmem:[%s5528_s2 + $0x70] sm:$0xff] }
  0xfe   : > { %v3778_v27 = vpack.c.bf16 %v1000_v26, %v994_v21  ;;  %v1002_v28 = vpop.f32.mrb[7].mxu1  ;;  %v3261_v20 = vld [vmem:[%s5528_s2 + $0x90] sm:$0xff]  ;;  %v3262_v21 = vld [vmem:[%s5528_s2 + $0x98] sm:$0xf] }
  0xff   : > { %v671_v24 = vpop.f32.mrb[8].mxu0  ;;  %v3776_v29 = vpack.c.bf16 %v1002_v28, %v996_v23 }
 0x100   : > { %v673_v25 = vpop.f32.mrb[9].mxu0 }
 0x101   : > { %v1006_v33 = vpop.f32.mrb[8].mxu1 }
 0x102   : > { %v1008_v35 = vpop.f32.mrb[9].mxu1 }
 0x103   : > { %v677_v30 = vpop.f32.mrb[10].mxu0 }
 0x104   : > { %v3748_v31 = vpack.c.bf16 %v677_v30, %v671_v24  ;;  %v679_v32 = vpop.f32.mrb[11].mxu0 }
 0x105   : > { %v3746_v34 = vpack.c.bf16 %v679_v32, %v673_v25  ;;  %v1012_v36 = vpop.f32.mrb[10].mxu1  ;;  %v1585_v25 = vld [vmem:[%s5529_s3] sm:$0x3] }
 0x106   : > { %v3783_v37 = vpack.c.bf16 %v1012_v36, %v1006_v33  ;;  %v1014_v38 = vpop.f32.mrb[11].mxu1 }
 0x107   : > { %3747 = vmatprep.subr.bf16.mxu0 %v3746_v34  ;;  %v3780_v39 = vpack.c.bf16 %v1014_v38, %v1008_v35 }
 0x108   : > { %3749 = vmatpush1.bf16.msra.mxu0 %v3748_v31 }
 0x109   : > { %3752 = vmatprep.subr.msk.bf16.mxu0 %vm4397_vm2, %v3750_v17  ;;  %v1218_v41 = vpop.f32.mrb[12].mxu1  ;;  %v3238_v17 = vld [vmem:[%s5528_s2 + $0x78] sm:$0xf] }
 0x10a   : > { %v1220_v42 = vpop.f32.mrb[13].mxu1 }
 0x10c   : > { %3755 = vmatpush1.bf16.msk.msra.mxu0 %vm4397_vm2, %v3753_v14  ;;  %v3235_v14 = vld [vmem:[%s5528_s2 + $0x60] sm:$0xff] }
 0x10d   : > { %3757 = vmatprep.subr.bf16.mxu0 %v3756_v11  ;;  %v1224_v44 = vpop.f32.mrb[14].mxu1  ;;  %v3212_v11 = vld [vmem:[%s5528_s2 + $0x48] sm:$0xff] }
 0x10e   : > { %v3798_v45 = vpack.c.bf16 %v1224_v44, %v1218_v41  ;;  %v1226_v46 = vpop.f32.mrb[15].mxu1 }
 0x10f   : > { %3187 = vmatmul.mubr.msk.f32.vlgmr.msra.gmra.mrb[12].mxu0 %vm477_vm3, %v3181_v40  ;;  %v3796_v47 = vpack.c.bf16 %v1226_v46, %v1220_v42 }
 0x110   : > { %3759 = vmatpush1.bf16.msra.mxu0 %v3758_v8  ;;  %787 = vmatprep.mubr.f32.mxu0 %v4244_v7 }
 0x111   : > { %3762 = vmatprep.subr.msk.bf16.mxu0 %vm4397_vm2, %v3760_v22  ;;  %v1230_v49 = vpop.f32.mrb[16].mxu1  ;;  %v1587_v22 = vlaneseq }
 0x112   : > { %v1232_v50 = vpop.f32.mrb[17].mxu1 }
 0x113   : > { %3188 = vmatmul.mubr.msk.f32.gmra.mrb[14].mxu0 %vm477_vm3, %v3182_v43  ;;  %v4723_v23 = vshrl.u32 %v1587_v22, 7  ;;  %v3276_v22 = vld [vmem:[%s5531_s5 + $0xc0] sm:$0xff] }
 0x114   : > { %3765 = vmatpush1.bf16.msk.msra.mxu0 %vm4397_vm2, %v3763_v19  ;;  %793 = vmatprep.mubr.f32.mxu0 %v4244_v7  ;;  %v3260_v19 = vld [vmem:[%s5528_s2 + $0x88] sm:$0xff] }
 0x115   : > { %3777 = vmatprep.subr.bf16.mxu0 %v3776_v29  ;;  %v1236_v52 = vpop.f32.mrb[18].mxu1  ;;  %v1589_v24 = vsub.s32 0, %v4723_v23  ;;  %v1593_v26 = vsub.s32 1, %v4723_v23 }
 0x116   : > { %v3803_v53 = vpack.c.bf16 %v1236_v52, %v1230_v49  ;;  %v1238_v54 = vpop.f32.mrb[19].mxu1 }
 0x117   : > { %3189 = vmatmul.mubr.msk.f32.gmra.mrb[16].mxu0 %vm477_vm3, %v3183_v48  ;;  %v3800_v55 = vpack.c.bf16 %v1238_v54, %v1232_v50  ;;  %v1594_v28 = vrot.slane %v1585_v25, %v1593_v26 }
 0x118   : > { %799 = vmatprep.mubr.f32.mxu0 %v4244_v7 }
 0x119   : > { %v1442_v57 = vpop.f32.mrb[20].mxu1 }
 0x11a   : > { %v1444_v58 = vpop.f32.mrb[21].mxu1 }
 0x11b   : > { %3190 = vmatmul.mubr.msk.f32.gmra.mrb[18].mxu0 %vm477_vm3, %v3184_v51 }
 0x11c   : > { %888 = vmatprep.mubr.f32.mxu0 %v4244_v7 }
 0x11d   : > { %v1448_v60 = vpop.f32.mrb[22].mxu1 }
 0x11e   : > { %v3818_v61 = vpack.c.bf16 %v1448_v60, %v1442_v57  ;;  %v1450_v62 = vpop.f32.mrb[23].mxu1 }
 0x11f   : > { %3193 = vmatmul.mubr.msk.f32.vlgmr.msra.gmra.mrb[12].mxu0 %vm477_vm3, %v586_v56  ;;  %v3816_v63 = vpack.c.bf16 %v1450_v62, %v1444_v58 }
 0x120   : > { %3779 = vmatpush1.bf16.msra.mxu0 %v3778_v27  ;;  %894 = vmatprep.mubr.f32.mxu0 %v4244_v7  ;;  %v1590_v27 = vrot.slane %v1585_v25, %v1589_v24  ;;  %v3279_v25 = vld [vmem:[%s5531_s5 + $0xd8] sm:$0xff] }
 0x121   : > { %3782 = vmatprep.subr.msk.bf16.mxu0 %vm4397_vm2, %v3780_v39  ;;  %v1454_v1 = vpop.f32.mrb[24].mxu1 }
 0x122   : > { %v1456_v2 = vpop.f32.mrb[25].mxu1 }
 0x123   : > { %3194 = vmatmul.mubr.msk.f32.gmra.mrb[14].mxu0 %vm477_vm3, %v587_v59 }
 0x124   : > { %900 = vmatprep.mubr.f32.mxu0 %v4244_v7  ;;  %3785 = vmatpush1.bf16.msk.msra.mxu0 %vm4397_vm2, %v3783_v37 }
 0x125   : > { %3797 = vmatprep.subr.bf16.mxu0 %v3796_v47  ;;  %v1460_v4 = vpop.f32.mrb[26].mxu1 }
 0x126   : > { %v3823_v5 = vpack.c.bf16 %v1460_v4, %v1454_v1  ;;  %v1462_v6 = vpop.f32.mrb[27].mxu1 }
 0x127   : > { %3195 = vmatmul.mubr.msk.f32.gmra.mrb[16].mxu0 %vm477_vm3, %v588_v0  ;;  %v3820_v8 = vpack.c.bf16 %v1462_v6, %v1456_v2 }
 0x128   : > { %906 = vmatprep.mubr.f32.mxu0 %v4244_v7 }
 0x12b   : > { %3196 = vmatmul.mubr.msk.f32.gmra.mrb[18].mxu0 %vm477_vm3, %v589_v3 }
 0x12c   : > { %1104 = vmatprep.mubr.f32.mxu0 %v4244_v7 }
 0x12f   : > { %3217 = vmatmul.mubr.msk.f32.vlgmr.msra.gmra.mrb[12].mxu0 %vm477_vm3, %v3211_v9 }
 0x130   : > { %3799 = vmatpush1.bf16.msra.mxu0 %v3798_v45  ;;  %1110 = vmatprep.mubr.f32.mxu0 %v4244_v7 }
 0x131   : > { %3802 = vmatprep.subr.msk.bf16.mxu0 %vm4397_vm2, %v3800_v55  ;;  %v1650_v55 = vld [vmem:[%s5530_s4] sm:$0xff] }
 0x132   : > { %3540 = vmatprep.mubr.msk.f32.mxu1 %vm477_vm3, %v1650_v55  ;;  %v3294_v55 = vld [vmem:[%s5531_s5 + $0x150] sm:$0xf] }
 0x133   : > { %3218 = vmatmul.mubr.msk.f32.gmra.mrb[14].mxu0 %vm477_vm3, %v3212_v11 }
 0x134   : > { %1116 = vmatprep.mubr.f32.mxu0 %v4244_v7  ;;  %3805 = vmatpush1.bf16.msk.msra.mxu0 %vm4397_vm2, %v3803_v53 }
 0x135   : > { %3817 = vmatprep.subr.bf16.mxu0 %v3816_v63 }
 0x137   : > { %3219 = vmatmul.mubr.msk.f32.gmra.mrb[16].mxu0 %vm477_vm3, %v3213_v12 }
 0x138   : > { %1122 = vmatprep.mubr.f32.mxu0 %v4244_v7 }
 0x13b   : > { %3220 = vmatmul.mubr.msk.f32.gmra.mrb[18].mxu0 %vm477_vm3, %v3214_v13 }
 0x13c   : > { %1328 = vmatprep.mubr.f32.mxu0 %v4244_v7 }
 0x13f   : > { %3241 = vmatmul.mubr.msk.f32.vlgmr.msra.gmra.mrb[12].mxu0 %vm477_vm3, %v3235_v14 }
 0x140   : > { %3819 = vmatpush1.bf16.msra.mxu0 %v3818_v61  ;;  %1334 = vmatprep.mubr.f32.mxu0 %v4244_v7 }
 0x141   : > { %3822 = vmatprep.subr.msk.bf16.mxu0 %vm4397_vm2, %v3820_v8 }
 0x143   : > { %3242 = vmatmul.mubr.msk.f32.gmra.mrb[14].mxu0 %vm477_vm3, %v3236_v15  ;;  %v3275_v15 = vld [vmem:[%s5531_s5 + $0xb8] sm:$0xff] }
 0x144   : > { %1340 = vmatprep.mubr.f32.mxu0 %v4244_v7  ;;  %3825 = vmatpush1.bf16.msk.msra.mxu0 %vm4397_vm2, %v3823_v5 }
 0x147   : > { %3243 = vmatmul.mubr.msk.f32.gmra.mrb[16].mxu0 %vm477_vm3, %v3237_v16  ;;  %v3277_v16 = vld [vmem:[%s5531_s5 + $0xc8] sm:$0xff] }
 0x148   : > { %1346 = vmatprep.mubr.f32.mxu0 %v4244_v7 }
 0x14b   : > { %3244 = vmatmul.mubr.msk.f32.gmra.mrb[18].mxu0 %vm477_vm3, %v3238_v17 }
 0x14c   : > { %1552 = vmatprep.mubr.f32.mxu0 %v4244_v7 }
 0x14f   : > { %3265 = vmatmul.mubr.msk.f32.vlgmr.msra.gmra.mrb[12].mxu0 %vm477_vm3, %v3259_v18 }
 0x150   : > { %1558 = vmatprep.mubr.f32.mxu0 %v4244_v7 }
 0x153   : > { %3266 = vmatmul.mubr.msk.f32.gmra.mrb[14].mxu0 %vm477_vm3, %v3260_v19 }
 0x154   : > { %1564 = vmatprep.mubr.f32.mxu0 %v4244_v7 }
 0x157   : > { %3267 = vmatmul.mubr.msk.f32.gmra.mrb[16].mxu0 %vm477_vm3, %v3261_v20  ;;  %v3836_v20 = vpack.c.bf16 %v3277_v16, %v3275_v15 }
 0x158   : > { %1570 = vmatprep.mubr.f32.mxu0 %v4244_v7 }
 0x15b   : > { %3268 = vmatmul.mubr.msk.f32.gmra.mrb[18].mxu0 %vm477_vm3, %v3262_v21  ;;  %v3274_v21 = vld [vmem:[%s5531_s5 + $0xb0] sm:$0xff] }
 0x222   : > { %v1554_v29 = vpop.f32.mrb[12].mxu0 }
 0x223   : > { %v1597_v30 = vadd.f32 %v1590_v27, %v1554_v29  ;;  %v1556_v31 = vpop.f32.mrb[13].mxu0  ;;  %v3838_v29 = vpack.c.bf16 %v3276_v22, %v3274_v21 }
 0x224   : > { %v1598_v32 = vadd.f32 %v1594_v28, %v1556_v31 }
 0x225   : > { %v1605_v33 = vmax.f32 %v1597_v30, 0.0  ;;  %v1652_v30 = vld [vmem:[%s5530_s4 + $0x10] sm:$0xff] }
 0x226   : > { %v1606_v34 = vmax.f32 %v1598_v32, 0.0  ;;  %v1560_v35 = vpop.f32.mrb[14].mxu0  ;;  %v3278_v32 = vld [vmem:[%s5531_s5 + $0xd0] sm:$0xff] }
 0x227   : > { %v1599_v36 = vadd.f32 %v1590_v27, %v1560_v35  ;;  %v1562_v37 = vpop.f32.mrb[15].mxu0  ;;  %v1653_v35 = vld [vmem:[%s5530_s4 + $0x18] sm:$0xf] }
 0x228   : > { %v1600_v38 = vadd.f32 %v1594_v28, %v1562_v37  ;;  %v4150_v39 = vpack.i.bf16 %v1606_v34, %v1605_v33  ;;  %v3285_v34 = vld [vmem:[%s5531_s5 + $0x108] sm:$0xff] }
 0x229   : > { %v1607_v40 = vmax.f32 %v1599_v36, 0.0  ;;  %v3842_v36 = vpack.c.bf16 %v3280_v10, %v3278_v32 }
 0x22a   : > { %v1608_v41 = vmax.f32 %v1600_v38, 0.0  ;;  %4151 = vrot.lane.b32.xlu0 %v4150_v39, %s4246_s25  ;;  %v1566_v42 = vpop.f32.mrb[16].mxu0  ;;  %v3282_v38 = vld [vmem:[%s5531_s5 + $0xf0] sm:$0xff]  ;;  %v3284_v39 = vld [vmem:[%s5531_s5 + $0x100] sm:$0xff] }
 0x22b   : > { %v1601_v43 = vadd.f32 %v1590_v27, %v1566_v42  ;;  %v1568_v44 = vpop.f32.mrb[17].mxu0  ;;  %v3289_v42 = vld [vmem:[%s5531_s5 + $0x128] sm:$0xff] }
 0x22c   : > { %v4155_v45 = vpack.i.bf16 %v1608_v41, %v1607_v40  ;;  %v1602_v46 = vadd.f32 %v1594_v28, %v1568_v44  ;;  %v3287_v41 = vld [vmem:[%s5531_s5 + $0x118] sm:$0xff]  ;;  %v3286_v44 = vld [vmem:[%s5531_s5 + $0x110] sm:$0xff] }
 0x22d   : > { %v1609_v47 = vmax.f32 %v1601_v43, 0.0  ;;  %v3848_v43 = vpack.c.bf16 %v3289_v42, %v3287_v41  ;;  %v1784_v41 = vld [vmem:[%s5531_s5 + $0x88] sm:$0xff]  ;;  %v1786_v42 = vld [vmem:[%s5531_s5 + $0x98] sm:$0xff] }
 0x22e   : > { %v1610_v48 = vmax.f32 %v1602_v46, 0.0  ;;  %4156 = vrot.lane.b32.xlu0 %v4155_v45, %s4246_s25  ;;  %v1572_v49 = vpop.f32.mrb[18].mxu0  ;;  %v3288_v45 = vld [vmem:[%s5531_s5 + $0x120] sm:$0xff] }
 0x22f   : > { %v1603_v50 = vadd.f32 %v1590_v27, %v1572_v49  ;;  %v1574_v51 = vpop.f32.mrb[19].mxu0  ;;  %v3281_v27 = vld [vmem:[%s5531_s5 + $0xe8] sm:$0xff]  ;;  %v3850_v46 = vpack.c.bf16 %v3288_v45, %v3286_v44  ;;  %v3872_v44 = vpack.c.bf16 %v1786_v42, %v1784_v41  ;;  %v1783_v45 = vld [vmem:[%s5531_s5 + $0x80] sm:$0xff] }
 0x230   : > { %v1604_v52 = vadd.f32 %v1594_v28, %v1574_v51  ;;  %v4160_v53 = vpack.i.bf16 %v1610_v48, %v1609_v47  ;;  %v1651_v28 = vld [vmem:[%s5530_s4 + $0x8] sm:$0xff]  ;;  %v3840_v31 = vpack.c.bf16 %v3281_v27, %v3279_v25  ;;  %v3292_v51 = vld [vmem:[%s5531_s5 + $0x140] sm:$0xff] }
 0x231   : > { %v1611_v54 = vmax.f32 %v1603_v50, 0.0  ;;  %v3293_v48 = vld [vmem:[%s5531_s5 + $0x148] sm:$0xff]  ;;  %v3290_v50 = vld [vmem:[%s5531_s5 + $0x130] sm:$0xff] }
 0x232   : > { %v1612_v56 = vmax.f32 %v1604_v52, 0.0  ;;  %4161 = vrot.lane.b32.xlu1 %v4160_v53, %s4246_s25  ;;  %v3854_v52 = vpack.c.bf16 %v3292_v51, %v3290_v50  ;;  %v3295_v53 = vld [vmem:[%s5531_s5 + $0x158] sm:$0xf]  ;;  %v1776_v27 = vld [vmem:[%s5531_s5 + $0x48] sm:$0xff]  ;;  %v3304_v51 = vld [vmem:[%s5531_s5 + $0x160] sm:$0xff] }
 0x233   : > { %v3307_v50 = vld [vmem:[%s5531_s5 + $0x178] sm:$0xff]  ;;  %v3341_v41 = vld [vmem:[%s5531_s5 + $0x268] sm:$0xff] }
 0x234   : > { %v4165_v57 = vpack.i.bf16 %v1612_v56, %v1611_v54  ;;  %v1770_v56 = vld [vmem:[%s5531_s5 + $0x18] sm:$0xff] }
 0x236   : > { %4166 = vrot.lane.b32.xlu1 %v4165_v57, %s4246_s25  ;;  %s459_s25 = scalar_lea.vmem [#allocation2], %s458_s28 }
 0x237   : > { %s3100_s26 = sshll.u32 %s459_s25, 4  ;;  %s5486_s26 = int_to_ptr.vmem [resolvable:$true] %s3100_s26 }
 0x238   : > { %s4180_s27 = scalar_lea.vmem %s5486_s26, 16  ;;  %p4187_p0 = scmp.lt.s32.totalorder %s5486_s26, %s4185_s20 }
 0x239   : > { %p4181_p11 = scmp.ne.s32.totalorder %s5486_s26, %s4180_s27  ;;  %p4188_p1 = scmp.lt.s32.totalorder %s4186_s24, %s4180_s27 }
 0x23b   : > { %p4182_p12 = pnand %p4181_p11, %p4364_p5  ;;  %p4189_p2 = por %p4188_p1, %p4187_p0 }
 0x23d   : > { %p4183_p13 = pneg %p4182_p12 }
 0x23f   : > { %p4190_p3 = pnand %p4189_p2, %p4183_p13 }
 0x29c   : > { %v4152_v58 = vpop.permute.xlu0 %4151 }
 0x29d   : > { %v4154_v59 = vunpack.i.h.bf16 %v4152_v58  ;;  %v4153_v60 = vunpack.i.l.bf16 %v4152_v58 }
 0x29f   : > { %v1638_v62 = vsel %vm1637_vm4, %v4153_v60, %v4154_v59 }
 0x2a0   : > { %v4157_v61 = vpop.permute.xlu0 %4156  ;;  %v1646_v3 = vmax.f32 %v1605_v33, %v1638_v62  ;;  %v3283_v33 = vld [vmem:[%s5531_s5 + $0xf8] sm:$0xff] }
 0x2a1   : > { %v4159_v63 = vunpack.i.h.bf16 %v4157_v61  ;;  %v4158_v0 = vunpack.i.l.bf16 %v4157_v61  ;;  %v3844_v37 = vpack.c.bf16 %v3285_v34, %v3283_v33  ;;  %v1775_v33 = vld [vmem:[%s5531_s5 + $0x40] sm:$0xff]  ;;  %v1777_v34 = vld [vmem:[%s5531_s5 + $0x50] sm:$0xff] }
 0x2a3   : > { %v1639_v1 = vsel %vm1637_vm4, %v4158_v0, %v4159_v63 }
 0x2a4   : > { %v4162_v2 = vpop.permute.xlu1 %4161  ;;  %v1647_v4 = vmax.f32 %v1607_v40, %v1639_v1  ;;  %v3846_v40 = vpack.c.bf16 %v3284_v39, %v3282_v38  ;;  %v1767_v1 = vld [vmem:[%s5531_s5] sm:$0xff] }
 0x2a5   : > { %v4164_v5 = vunpack.i.h.bf16 %v4162_v2  ;;  %v4163_v6 = vunpack.i.l.bf16 %v4162_v2  ;;  %v1769_v2 = vld [vmem:[%s5531_s5 + $0x10] sm:$0xff]  ;;  %v1779_v39 = vld [vmem:[%s5531_s5 + $0x60] sm:$0xff] }
 0x2a6   : > { %v3826_v8 = vpack.c.bf16 %v1647_v4, %v1646_v3  ;;  %v1772_v3 = vld [vmem:[%s5531_s5 + $0x28] sm:$0xff]  ;;  %v1774_v4 = vld [vmem:[%s5531_s5 + $0x38] sm:$0xff] }
 0x2a7   : > { %v1640_v11 = vsel %vm1637_vm4, %v4163_v6, %v4164_v5 }
 0x2a8   : > { %3827 = vmatprep.subr.bf16.mxu1 %v3826_v8  ;;  %v4167_v9 = vpop.permute.xlu1 %4166  ;;  %v1648_v17 = vmax.f32 %v1609_v47, %v1640_v11  ;;  %v3291_v47 = vld [vmem:[%s5531_s5 + $0x138] sm:$0xff]  ;;  %v3858_v11 = vpack.c.bf16 %v1769_v2, %v1767_v1  ;;  %v3312_v1 = vld [vmem:[%s5531_s5 + $0x1a0] sm:$0xff]  ;;  %v3314_v2 = vld [vmem:[%s5531_s5 + $0x1b0] sm:$0xff] }
 0x2a9   : > { %v4169_v12 = vunpack.i.h.bf16 %v4167_v9  ;;  %v4168_v13 = vunpack.i.l.bf16 %v4167_v9  ;;  %3829 = vmatpush3.bf16.msra.mxu1 %v3826_v8  ;;  %v3852_v49 = vpack.c.bf16 %v3293_v48, %v3291_v47  ;;  %v1788_v48 = vld [vmem:[%s5531_s5 + $0xa8] sm:$0xf] }
 0x2ab   : > { %v1641_v14 = vsel %vm1637_vm4, %v4168_v13, %v4169_v12  ;;  %v3860_v12 = vpack.c.bf16 %v1774_v4, %v1772_v3  ;;  %v3317_v3 = vld [vmem:[%s5531_s5 + $0x1c8] sm:$0xff]  ;;  %v3319_v4 = vld [vmem:[%s5531_s5 + $0x1d8] sm:$0xff] }
 0x2ac   : > { %v1649_v18 = vmax.f32 %v1611_v54, %v1641_v14  ;;  %v1768_v54 = vld [vmem:[%s5531_s5 + $0x8] sm:$0xff] }
 0x2ad   : > { %v3856_v57 = vpack.c.bf16 %v1770_v56, %v1768_v54  ;;  %v3311_v54 = vld [vmem:[%s5531_s5 + $0x198] sm:$0xff] }
 0x2ae   : > { %v3830_v19 = vpack.c.bf16 %v1649_v18, %v1648_v17  ;;  %v1771_v17 = vld [vmem:[%s5531_s5 + $0x20] sm:$0xff]  ;;  %v1773_v18 = vld [vmem:[%s5531_s5 + $0x30] sm:$0xff] }
 0x2af   : > { %v3862_v32 = vpack.c.bf16 %v1773_v18, %v1771_v17  ;;  %v3320_v17 = vld [vmem:[%s5531_s5 + $0x1e0] sm:$0xff]  ;;  %v3322_v18 = vld [vmem:[%s5531_s5 + $0x1f0] sm:$0xff] }
 0x2b0   : > { %3832 = vmatprep.subr.msk.bf16.mxu1 %vm4397_vm2, %v3830_v19 }
 0x2b1   : > { %3835 = vmatpush3.bf16.msk.msra.mxu1 %vm4397_vm2, %v3830_v19 }
 0x2b2   : > { %3837 = vmatprep.subr.bf16.mxu1 %v3836_v20 }
 0x2b4   : > { %3541 = vmatmul.mubr.msk.f32.vlgmr.msra.gmra.mrb[28].mxu1 %vm477_vm3, %v1651_v28  ;;  %v1778_v28 = vld [vmem:[%s5531_s5 + $0x58] sm:$0xff] }
 0x2b5   : > { %3543 = vmatprep.mubr.msk.f32.mxu1 %vm477_vm3, %v1652_v30  ;;  %3839 = vmatpush1.bf16.msra.mxu1 %v3838_v29  ;;  %v3864_v10 = vpack.c.bf16 %v1778_v28, %v1776_v27  ;;  %v3333_v27 = vld [vmem:[%s5531_s5 + $0x228] sm:$0xff]  ;;  %v3330_v28 = vld [vmem:[%s5531_s5 + $0x210] sm:$0xff] }
 0x2b6   : > { %3841 = vmatprep.subr.bf16.mxu1 %v3840_v31 }
 0x2b8   : > { %3544 = vmatmul.mubr.msk.f32.gmra.mrb[30].mxu1 %vm477_vm3, %v1653_v35  ;;  %v1780_v35 = vld [vmem:[%s5531_s5 + $0x68] sm:$0xff] }
 0x2b9   : > { %3843 = vmatpush1.bf16.msra.mxu1 %v3842_v36  ;;  %1893 = vmatprep.mubr.f32.mxu1 %v4244_v7  ;;  %v1782_v36 = vld [vmem:[%s5531_s5 + $0x78] sm:$0xff] }
 0x2ba   : > { %3845 = vmatprep.subr.bf16.mxu1 %v3844_v37  ;;  %v3866_v37 = vpack.c.bf16 %v1777_v34, %v1775_v33  ;;  %v3868_v38 = vpack.c.bf16 %v1782_v36, %v1780_v35  ;;  %v3337_v33 = vld [vmem:[%s5531_s5 + $0x248] sm:$0xff]  ;;  %v3324_v34 = vld [vmem:[%s5531_s5 + $0x200] sm:$0xf] }
 0x2bd   : > { %3847 = vmatpush1.bf16.msra.mxu1 %v3846_v40  ;;  %v1781_v40 = vld [vmem:[%s5531_s5 + $0x70] sm:$0xff] }
 0x2be   : > { %3849 = vmatprep.subr.bf16.mxu1 %v3848_v43  ;;  %v3870_v43 = vpack.c.bf16 %v1781_v40, %v1779_v39  ;;  %v3336_v39 = vld [vmem:[%s5531_s5 + $0x240] sm:$0xff]  ;;  %v3339_v40 = vld [vmem:[%s5531_s5 + $0x258] sm:$0xff] }
 0x2c1   : > { %3851 = vmatpush1.bf16.msra.mxu1 %v3850_v46  ;;  %v1785_v46 = vld [vmem:[%s5531_s5 + $0x90] sm:$0xff] }
 0x2c2   : > { %3853 = vmatprep.subr.bf16.mxu1 %v3852_v49  ;;  %v3874_v47 = vpack.c.bf16 %v1785_v46, %v1783_v45  ;;  %v3305_v49 = vld [vmem:[%s5531_s5 + $0x168] sm:$0xff]  ;;  %v3340_v45 = vld [vmem:[%s5531_s5 + $0x260] sm:$0xff]  ;;  %v3343_v46 = vld [vmem:[%s5531_s5 + $0x278] sm:$0xff] }
 0x2c3   : > { %v3876_v56 = vpack.c.bf16 %v3307_v50, %v3305_v49  ;;  %v3342_v49 = vld [vmem:[%s5531_s5 + $0x270] sm:$0xff]  ;;  %v3344_v50 = vld [vmem:[%s5531_s5 + $0x280] sm:$0xff] }
 0x2c5   : > { %3855 = vmatpush1.bf16.msra.mxu1 %v3854_v52  ;;  %v3306_v52 = vld [vmem:[%s5531_s5 + $0x170] sm:$0xff] }
 0x2c6   : > { %3296 = vmatprep.subr.msk.mxu1 %vm490_vm0, %v3295_v53  ;;  %v3309_v53 = vld [vmem:[%s5531_s5 + $0x188] sm:$0xff] }
 0x2c9   : > { %3297 = vmatpush1.msk.msra.mxu1 %vm490_vm0, %v3294_v55  ;;  %v1787_v55 = vld [vmem:[%s5531_s5 + $0xa0] sm:$0xf] }
 0x2ca   : > { %3857 = vmatprep.subr.bf16.mxu1 %v3856_v57  ;;  %v3878_v57 = vpack.c.bf16 %v3306_v52, %v3304_v51  ;;  %v3347_v51 = vld [vmem:[%s5531_s5 + $0x298] sm:$0xff]  ;;  %v3910_v52 = vpack.c.bf16 %v3344_v50, %v3342_v49  ;;  %v3420_v49 = vld [vmem:[%s5534_s8 + $0x148] sm:$0xff] }
 0x387   : > { %v3542_v58 = vpop.f32.mrb[28].mxu1 }
 0x388   : > { %v1735_v59 = vpop.f32.mrb[29].mxu1  ;;  %v1758_v63 = vrot.slane %v3542_v58, 6 }
 0x38b   : > { %v3545_v60 = vpop.f32.mrb[30].mxu1 }
 0x38c   : > { %v1761_v61 = vrot.slane %v3545_v60, 6  ;;  %v1745_v62 = vpop.f32.mrb[31].mxu1  ;;  %v3310_v60 = vld [vmem:[%s5531_s5 + $0x190] sm:$0xff] }
 0x38d   : > { %v1759_v0 = vrot.slane %v1745_v62, 6  ;;  %v3315_v62 = vld [vmem:[%s5531_s5 + $0x1b8] sm:$0xff] }
 0x38f   : > { %v1760_v5 = vsel %vm1757_vm5, %v1758_v63, %v1759_v0  ;;  %v1762_v6 = vsel %vm1757_vm5, %v1759_v0, %v1761_v61  ;;  %v3313_v61 = vld [vmem:[%s5531_s5 + $0x1a8] sm:$0xff] }
 0x390   : > { %v4847_v8 = vmax.f32 %v1735_v59, %v1760_v5  ;;  %v4849_v9 = vmax.f32 %v3542_v58, %v1762_v6  ;;  %v3880_v58 = vpack.c.bf16 %v3311_v54, %v3309_v53  ;;  %v3308_v59 = vld [vmem:[%s5531_s5 + $0x180] sm:$0xff]  ;;  %v3884_v0 = vpack.c.bf16 %v3315_v62, %v3313_v61  ;;  %v3346_v54 = vld [vmem:[%s5531_s5 + $0x290] sm:$0xff]  ;;  %v3361_v62 = vld [vmem:[%s5531_s5 + $0x2e8] sm:$0xff] }
 0x391   : > { %v3882_v63 = vpack.c.bf16 %v3310_v60, %v3308_v59  ;;  %v3886_v5 = vpack.c.bf16 %v3314_v2, %v3312_v1  ;;  %v3888_v6 = vpack.c.bf16 %v3319_v4, %v3317_v3  ;;  %v3359_v59 = vld [vmem:[%s5531_s5 + $0x2d8] sm:$0xff]  ;;  %v3356_v60 = vld [vmem:[%s5531_s5 + $0x2c0] sm:$0xff]  ;;  %v3358_v61 = vld [vmem:[%s5531_s5 + $0x2d0] sm:$0xff] }
 0x392   : > { %v1815_v13 = vrot.slane %v4847_v8, 1  ;;  %v1816_v14 = vrot.slane %v4849_v9, 1  ;;  %v2017_v15 = vrot.slane %v4847_v8, 2  ;;  %v2018_v16 = vrot.slane %v4849_v9, 2  ;;  %v3360_v4 = vld [vmem:[%s5531_s5 + $0x2e0] sm:$0xff] }
 0x393   : > { %v2135_v19 = vrot.slane %v4847_v8, 3  ;;  %v2136_v20 = vrot.slane %v4849_v9, 3  ;;  %v2252_v21 = vrot.slane %v4847_v8, 4  ;;  %v2253_v22 = vrot.slane %v4849_v9, 4 }
 0x394   : > { %v1817_v25 = vsel %vm1814_vm6, %v1815_v13, %v1816_v14  ;;  %v4874_v29 = vsel %vm2016_vm8, %v2017_v15, %v2018_v16  ;;  %v3323_v13 = vld [vmem:[%s5531_s5 + $0x1f8] sm:$0xff]  ;;  %v3918_v2 = vpack.c.bf16 %v3358_v61, %v3356_v60  ;;  %v3385_v61 = vld [vmem:[%s5534_s8 + $0x50] sm:$0xff] }
 0x395   : > { %3298 = vmatmul.mubr.msk.f32.vlgmr.msra.gmra.mrb[32].mxu1 %vm1818_vm7, %v1817_v25  ;;  %v4880_v30 = vsel %vm2134_vm9, %v2135_v19, %v2136_v20  ;;  %v4885_v31 = vsel %vm490_vm0, %v2252_v21, %v2253_v22  ;;  %v3894_v19 = vpack.c.bf16 %v3322_v18, %v3320_v17  ;;  %v3325_v21 = vld [vmem:[%s5531_s5 + $0x208] sm:$0xf]  ;;  %v3331_v25 = vld [vmem:[%s5531_s5 + $0x218] sm:$0xff] }
 0x396   : > { %3859 = vmatpush1.bf16.msra.mxu1 %v3858_v11  ;;  %1899 = vmatprep.mubr.f32.mxu1 %v4244_v7  ;;  %v3318_v11 = vld [vmem:[%s5531_s5 + $0x1d0] sm:$0xff]  ;;  %v3896_v35 = vpack.c.bf16 %v3333_v27, %v3331_v25  ;;  %v3373_v25 = vld [vmem:[%s5531_s5 + $0x348] sm:$0xff] }
 0x397   : > { %3861 = vmatprep.subr.bf16.mxu1 %v3860_v12  ;;  %v3321_v12 = vld [vmem:[%s5531_s5 + $0x1e8] sm:$0xff] }
 0x398   : > { %v3892_v15 = vpack.c.bf16 %v3323_v13, %v3321_v12  ;;  %v3364_v13 = vld [vmem:[%s5531_s5 + $0x300] sm:$0xff] }
 0x399   : > { %3299 = vmatmul.mubr.msk.f32.gmra.mrb[34].mxu1 %vm1818_vm7, %v1816_v14 }
 0x39a   : > { %3863 = vmatpush1.bf16.msra.mxu1 %v3862_v32  ;;  %1980 = vmatprep.mubr.f32.mxu1 %v4244_v7  ;;  %v3332_v32 = vld [vmem:[%s5531_s5 + $0x220] sm:$0xff] }
 0x39b   : > { %3865 = vmatprep.subr.bf16.mxu1 %v3864_v10  ;;  %v3335_v10 = vld [vmem:[%s5531_s5 + $0x238] sm:$0xff]  ;;  %v3898_v36 = vpack.c.bf16 %v3332_v32, %v3330_v28  ;;  %v3372_v32 = vld [vmem:[%s5531_s5 + $0x340] sm:$0xff] }
 0x39e   : > { %3867 = vmatpush1.bf16.msra.mxu1 %v3866_v37  ;;  %v3900_v37 = vpack.c.bf16 %v3337_v33, %v3335_v10  ;;  %v3374_v10 = vld [vmem:[%s5531_s5 + $0x350] sm:$0xff] }
 0x39f   : > { %3869 = vmatprep.subr.bf16.mxu1 %v3868_v38  ;;  %v3334_v38 = vld [vmem:[%s5531_s5 + $0x230] sm:$0xff]  ;;  %v3934_v33 = vpack.c.bf16 %v3374_v10, %v3372_v32  ;;  %v3427_v32 = vld [vmem:[%s5534_s8 + $0x180] sm:$0xff]  ;;  %v3428_v10 = vld [vmem:[%s5534_s8 + $0x188] sm:$0xff] }
 0x3a0   : > { %v3902_v42 = vpack.c.bf16 %v3336_v39, %v3334_v38 }
 0x3a2   : > { %3871 = vmatpush1.bf16.msra.mxu1 %v3870_v43  ;;  %v3904_v43 = vpack.c.bf16 %v3341_v41, %v3339_v40 }
 0x3a3   : > { %3873 = vmatprep.subr.bf16.mxu1 %v3872_v44  ;;  %v3338_v44 = vld [vmem:[%s5531_s5 + $0x250] sm:$0xff] }
 0x3a6   : > { %3875 = vmatpush1.bf16.msra.mxu1 %v3874_v47  ;;  %v3906_v47 = vpack.c.bf16 %v3340_v45, %v3338_v44 }
 0x3a7   : > { %3300 = vmatprep.subr.msk.mxu1 %vm490_vm0, %v1788_v48 }
 0x3aa   : > { %3301 = vmatpush1.msk.msra.mxu1 %vm490_vm0, %v1787_v55  ;;  %v3348_v55 = vld [vmem:[%s5531_s5 + $0x2a0] sm:$0xff] }
 0x3ab   : > { %3302 = vmatmul.mubr.msk.f32.vlgmr.msra.gmra.mrb[32].mxu1 %vm1818_vm7, %v4847_v8  ;;  %3877 = vmatprep.subr.bf16.mxu1 %v3876_v56  ;;  %v3316_v8 = vld [vmem:[%s5531_s5 + $0x1c0] sm:$0xff]  ;;  %v3914_v56 = vpack.c.bf16 %v3348_v55, %v3346_v54 }
 0x3ac   : > { %3879 = vmatpush1.bf16.msra.mxu1 %v3878_v57  ;;  %1986 = vmatprep.mubr.f32.mxu1 %v4244_v7  ;;  %v3890_v14 = vpack.c.bf16 %v3318_v11, %v3316_v8  ;;  %v3351_v57 = vld [vmem:[%s5531_s5 + $0x2b8] sm:$0xf] }
 0x3ad   : > { %3881 = vmatprep.subr.bf16.mxu1 %v3880_v58  ;;  %v3357_v58 = vld [vmem:[%s5531_s5 + $0x2c8] sm:$0xff]  ;;  %v3367_v8 = vld [vmem:[%s5531_s5 + $0x318] sm:$0xff] }
 0x3ae   : > { %v3916_v1 = vpack.c.bf16 %v3359_v59, %v3357_v58 }
 0x3af   : > { %3303 = vmatmul.mubr.msk.f32.gmra.mrb[34].mxu1 %vm1818_vm7, %v4849_v9 }
 0x3b0   : > { %3883 = vmatpush1.bf16.msra.mxu1 %v3882_v63  ;;  %2094 = vmatprep.mubr.f32.mxu1 %v4244_v7  ;;  %v3363_v63 = vld [vmem:[%s5531_s5 + $0x2f8] sm:$0xff] }
 0x3b1   : > { %3885 = vmatprep.subr.bf16.mxu1 %v3884_v0  ;;  %v3350_v0 = vld [vmem:[%s5531_s5 + $0x2b0] sm:$0xf]  ;;  %v3920_v3 = vpack.c.bf16 %v3363_v63, %v3361_v62  ;;  %v3386_v62 = vld [vmem:[%s5534_s8 + $0x58] sm:$0xff]  ;;  %v2386_v63 = vld [vmem:[%s5533_s7 + $0x8] sm:$0x3] }
 0x3b4   : > { %3887 = vmatpush1.bf16.msra.mxu1 %v3886_v5  ;;  %v3362_v5 = vld [vmem:[%s5531_s5 + $0x2f0] sm:$0xff] }
 0x3b5   : > { %3889 = vmatprep.subr.bf16.mxu1 %v3888_v6  ;;  %v3365_v6 = vld [vmem:[%s5531_s5 + $0x308] sm:$0xff]  ;;  %v3922_v11 = vpack.c.bf16 %v3362_v5, %v3360_v4  ;;  %v3389_v4 = vld [vmem:[%s5534_s8 + $0x70] sm:$0xff]  ;;  %v3390_v5 = vld [vmem:[%s5534_s8 + $0x78] sm:$0xff] }
 0x3b6   : > { %v3924_v12 = vpack.c.bf16 %v3367_v8, %v3365_v6  ;;  %v3949_v6 = vpack.c.bf16 %v3390_v5, %v3389_v4  ;;  %v3421_v8 = vld [vmem:[%s5534_s8 + $0x150] sm:$0xff]  ;;  %v3410_v5 = vld [vmem:[%s5534_s8 + $0x100] sm:$0xff] }
 0x3b8   : > { %3891 = vmatpush1.bf16.msra.mxu1 %v3890_v14  ;;  %v3366_v14 = vld [vmem:[%s5531_s5 + $0x310] sm:$0xff] }
 0x3b9   : > { %3893 = vmatprep.subr.bf16.mxu1 %v3892_v15  ;;  %v3369_v15 = vld [vmem:[%s5531_s5 + $0x328] sm:$0xff]  ;;  %v3926_v17 = vpack.c.bf16 %v3366_v14, %v3364_v13  ;;  %v3423_v13 = vld [vmem:[%s5534_s8 + $0x160] sm:$0xff] }
 0x3ba   : > { %v3424_v14 = vld [vmem:[%s5534_s8 + $0x168] sm:$0xff] }
 0x3bc   : > { %3895 = vmatpush1.bf16.msra.mxu1 %v3894_v19  ;;  %v3368_v19 = vld [vmem:[%s5531_s5 + $0x320] sm:$0xff] }
 0x3bd   : > { %3326 = vmatprep.subr.msk.mxu1 %vm490_vm0, %v3325_v21  ;;  %v3370_v21 = vld [vmem:[%s5531_s5 + $0x330] sm:$0xff] }
 0x3be   : > { %v3930_v27 = vpack.c.bf16 %v3370_v21, %v3368_v19  ;;  %v3425_v19 = vld [vmem:[%s5534_s8 + $0x170] sm:$0xff]  ;;  %v3426_v21 = vld [vmem:[%s5534_s8 + $0x178] sm:$0xff] }
 0x3c0   : > { %3327 = vmatpush1.msk.msra.mxu1 %vm490_vm0, %v3324_v34  ;;  %v3377_v34 = vld [vmem:[%s5531_s5 + $0x368] sm:$0xf] }
 0x3c1   : > { %3328 = vmatmul.mubr.msk.f32.vlgmr.msra.gmra.mrb[32].mxu1 %vm1818_vm7, %v4874_v29  ;;  %3897 = vmatprep.subr.bf16.mxu1 %v3896_v35  ;;  %v3345_v29 = vld [vmem:[%s5531_s5 + $0x288] sm:$0xff]  ;;  %v3376_v35 = vld [vmem:[%s5531_s5 + $0x360] sm:$0xf] }
 0x3c2   : > { %3899 = vmatpush1.bf16.msra.mxu1 %v3898_v36  ;;  %2100 = vmatprep.mubr.f32.mxu1 %v4244_v7  ;;  %v3908_v48 = vpack.c.bf16 %v3345_v29, %v3343_v46  ;;  %v2346_v36 = vld [vmem:[%s5532_s6] sm:$0x3] }
 0x3c3   : > { %3901 = vmatprep.subr.bf16.mxu1 %v3900_v37  ;;  %v2351_v37 = vrot.slane %v2346_v36, %v1589_v24  ;;  %v2355_v38 = vrot.slane %v2346_v36, %v1593_v26  ;;  %v4248_v26 = vmov 0.0|0.0  }
 0x3c5   : > { %3329 = vmatmul.mubr.msk.f32.gmra.mrb[34].mxu1 %vm1818_vm7, %v2018_v16  ;;  %v3349_v16 = vld [vmem:[%s5531_s5 + $0x2a8] sm:$0xff] }
 0x3c6   : > { %3903 = vmatpush1.bf16.msra.mxu1 %v3902_v42  ;;  %2212 = vmatprep.mubr.f32.mxu1 %v4244_v7  ;;  %v3912_v53 = vpack.c.bf16 %v3349_v16, %v3347_v51 }
 0x3c7   : > { %3905 = vmatprep.subr.bf16.mxu1 %v3904_v43 }
 0x3ca   : > { %3907 = vmatpush1.bf16.msra.mxu1 %v3906_v47  ;;  %v2385_v47 = vld [vmem:[%s5533_s7] sm:$0xff] }
 0x3cb   : > { %3909 = vmatprep.subr.bf16.mxu1 %v3908_v48  ;;  %3550 = vmatprep.mubr.msk.f32.mxu0 %vm2387_vm10, %v2385_v47  ;;  %v3419_v48 = vld [vmem:[%s5534_s8 + $0x140] sm:$0xff]  ;;  %v2486_v47 = vld [vmem:[%s5534_s8 + $0x30] sm:$0xff] }
 0x3cc   : > { %v4003_v50 = vpack.c.bf16 %v3420_v49, %v3419_v48  ;;  %v2488_v48 = vld [vmem:[%s5534_s8 + $0x40] sm:$0xff]  ;;  %v2489_v49 = vld [vmem:[%s5534_s8 + $0x48] sm:$0xff] }
 0x3ce   : > { %3911 = vmatpush1.bf16.msra.mxu1 %v3910_v52 }
 0x3cf   : > { %3913 = vmatprep.subr.bf16.mxu1 %v3912_v53 }
 0x3d2   : > { %3915 = vmatpush1.bf16.msra.mxu1 %v3914_v56 }
 0x3d3   : > { %3352 = vmatprep.subr.msk.mxu1 %vm490_vm0, %v3351_v57 }
 0x3d6   : > { %3353 = vmatpush1.msk.msra.mxu1 %vm490_vm0, %v3350_v0  ;;  %v3943_v0 = vpack.c.bf16 %v3386_v62, %v3385_v61  ;;  %v3405_v62 = vld [vmem:[%s5534_s8 + $0xe0] sm:$0xff] }
 0x3d7   : > { %3354 = vmatmul.mubr.msk.f32.vlgmr.msra.gmra.mrb[32].mxu1 %vm1818_vm7, %v4880_v30  ;;  %3917 = vmatprep.subr.bf16.mxu1 %v3916_v1  ;;  %v3371_v30 = vld [vmem:[%s5531_s5 + $0x338] sm:$0xff]  ;;  %v3387_v1 = vld [vmem:[%s5534_s8 + $0x60] sm:$0xff] }
 0x3d8   : > { %3919 = vmatpush1.bf16.msra.mxu1 %v3918_v2  ;;  %2218 = vmatprep.mubr.f32.mxu1 %v4244_v7  ;;  %v3928_v18 = vpack.c.bf16 %v3371_v30, %v3369_v15  ;;  %v3388_v2 = vld [vmem:[%s5534_s8 + $0x68] sm:$0xff]  ;;  %v4009_v15 = vpack.c.bf16 %v3424_v14, %v3423_v13  ;;  %v3391_v30 = vld [vmem:[%s5534_s8 + $0x80] sm:$0xff] }
 0x3d9   : > { %3921 = vmatprep.subr.bf16.mxu1 %v3920_v3  ;;  %v3946_v3 = vpack.c.bf16 %v3388_v2, %v3387_v1  ;;  %v3408_v1 = vld [vmem:[%s5534_s8 + $0xf0] sm:$0xff]  ;;  %v3409_v2 = vld [vmem:[%s5534_s8 + $0xf8] sm:$0xff]  ;;  %v3414_v14 = vld [vmem:[%s5534_s8 + $0x120] sm:$0xff] }
 0x3db   : > { %3355 = vmatmul.mubr.msk.f32.gmra.mrb[34].mxu1 %vm1818_vm7, %v2136_v20  ;;  %v3375_v20 = vld [vmem:[%s5531_s5 + $0x358] sm:$0xff] }
 0x3dc   : > { %3923 = vmatpush1.bf16.msra.mxu1 %v3922_v11  ;;  %2329 = vmatprep.mubr.f32.mxu1 %v4244_v7  ;;  %v3932_v28 = vpack.c.bf16 %v3375_v20, %v3373_v25  ;;  %v3422_v11 = vld [vmem:[%s5534_s8 + $0x158] sm:$0xff]  ;;  %v4012_v25 = vpack.c.bf16 %v3426_v21, %v3425_v19  ;;  %v3393_v20 = vld [vmem:[%s5534_s8 + $0x90] sm:$0xff] }
 0x3dd   : > { %3925 = vmatprep.subr.bf16.mxu1 %v3924_v12  ;;  %v4006_v12 = vpack.c.bf16 %v3422_v11, %v3421_v8  ;;  %v3412_v11 = vld [vmem:[%s5534_s8 + $0x110] sm:$0xff] }
 0x3e0   : > { %3927 = vmatpush1.bf16.msra.mxu1 %v3926_v17  ;;  %v3392_v17 = vld [vmem:[%s5534_s8 + $0x88] sm:$0xff] }
 0x3e1   : > { %3929 = vmatprep.subr.bf16.mxu1 %v3928_v18  ;;  %v3952_v18 = vpack.c.bf16 %v3392_v17, %v3391_v30  ;;  %v3416_v17 = vld [vmem:[%s5534_s8 + $0x130] sm:$0xff] }
 0x3e4   : > { %3931 = vmatpush1.bf16.msra.mxu1 %v3930_v27  ;;  %v3394_v27 = vld [vmem:[%s5534_s8 + $0x98] sm:$0xff] }
 0x3e5   : > { %3933 = vmatprep.subr.bf16.mxu1 %v3932_v28  ;;  %v3955_v28 = vpack.c.bf16 %v3394_v27, %v3393_v20  ;;  %v2907_v20 = vld [vmem:[%s5536_s10 + $0x8] sm:$0xff] }
 0x3e8   : > { %3935 = vmatpush1.bf16.msra.mxu1 %v3934_v33  ;;  %v4015_v33 = vpack.c.bf16 %v3428_v10, %v3427_v32  ;;  %v2909_v32 = vld [vmem:[%s5536_s10 + $0x18] sm:$0xff]  ;;  %v2910_v10 = vld [vmem:[%s5536_s10 + $0x20] sm:$0xff] }
 0x3e9   : > { %3378 = vmatprep.subr.msk.mxu1 %vm490_vm0, %v3377_v34 }
 0x3ec   : > { %3379 = vmatpush1.msk.msra.mxu1 %vm490_vm0, %v3376_v35 }
 0x3ed   : > { %3380 = vmatmul.mubr.msk.f32.vlgmr.msra.gmra.mrb[32].mxu1 %vm1818_vm7, %v4885_v31  ;;  %4002 = vmatprep.subr.bf16.mxu1 %v4248_v26 }
 0x3ee   : > { %2335 = vmatprep.mubr.f32.mxu1 %v4244_v7  ;;  %4004 = vmatpush3.bf16.msra.mxu1 %v4003_v50  ;;  %v3970_v50 = vpack.c.bf16 %v2489_v49, %v2488_v48  ;;  %v3001_v49 = vld [vmem:[%s5538_s12 + $0x20] sm:$0xff] }
 0x3ef   : > { %4005 = vmatprep.subr.bf16.mxu1 %v4248_v26 }
 0x3f1   : > { %3381 = vmatmul.mubr.msk.f32.gmra.mrb[34].mxu1 %vm1818_vm7, %v2253_v22 }
 0x3f2   : > { %4007 = vmatpush3.bf16.msra.mxu1 %v4006_v12  ;;  %3665 = vmatprep.mubr.msk.f32.mxu1 %vm4249_vm13, %v4244_v7  ;;  %v3413_v12 = vld [vmem:[%s5534_s8 + $0x118] sm:$0xff] }
 0x3f3   : > { %4008 = vmatprep.subr.bf16.mxu1 %v4248_v26  ;;  %v3994_v13 = vpack.c.bf16 %v3413_v12, %v3412_v11  ;;  %v3007_v12 = vld [vmem:[%s5538_s12 + $0x50] sm:$0xf] }
 0x3f6   : > { %4010 = vmatpush3.bf16.msra.mxu1 %v4009_v15  ;;  %v3415_v15 = vld [vmem:[%s5534_s8 + $0x128] sm:$0xff] }
 0x3f7   : > { %4011 = vmatprep.subr.bf16.mxu1 %v4248_v26  ;;  %v3997_v30 = vpack.c.bf16 %v3415_v15, %v3414_v14 }
 0x3fa   : > { %4013 = vmatpush3.bf16.msra.mxu1 %v4012_v25  ;;  %v2906_v25 = vld [vmem:[%s5536_s10] sm:$0xff] }
 0x3fb   : > { %4014 = vmatprep.subr.bf16.mxu1 %v4248_v26  ;;  %v4018_v27 = vpack.c.bf16 %v2907_v20, %v2906_v25 }
 0x3fe   : > { %4016 = vmatpush3.bf16.msra.mxu1 %v4015_v33 }
 0x3ff   : > { %4038 = vmatprep.subr.bf16.mxu1 %v4248_v26 }
 0x4c0   : > { %v2331_v39 = vpop.f32.mrb[32].mxu1 }
 0x4c1   : > { %v2358_v40 = vadd.f32 %v2351_v37, %v2331_v39  ;;  %v2333_v41 = vpop.f32.mrb[33].mxu1  ;;  %v2481_v39 = vld [vmem:[%s5534_s8 + $0x8] sm:$0xff] }
 0x4c2   : > { %v2359_v31 = vadd.f32 %v2355_v38, %v2333_v41 }
 0x4c3   : > { %v2362_v42 = vmax.f32 %v2358_v40, 0.0 }
 0x4c4   : > { %v2363_v43 = vmax.f32 %v2359_v31, 0.0  ;;  %v2337_v44 = vpop.f32.mrb[34].mxu1 }
 0x4c5   : > { %v2360_v9 = vadd.f32 %v2351_v37, %v2337_v44  ;;  %v2339_v45 = vpop.f32.mrb[35].mxu1  ;;  %v2482_v44 = vld [vmem:[%s5534_s8 + $0x10] sm:$0xff] }
 0x4c6   : > { %v4170_v22 = vpack.i.bf16 %v2363_v43, %v2362_v42  ;;  %v2361_v46 = vadd.f32 %v2355_v38, %v2339_v45  ;;  %v2480_v38 = vld [vmem:[%s5534_s8] sm:$0xff] }
 0x4c7   : > { %v2364_v29 = vmax.f32 %v2360_v9, 0.0  ;;  %v3958_v31 = vpack.c.bf16 %v2481_v39, %v2480_v38  ;;  %v2483_v9 = vld [vmem:[%s5534_s8 + $0x18] sm:$0xff]  ;;  %v2914_v39 = vld [vmem:[%s5536_s10 + $0x40] sm:$0xff] }
 0x4c8   : > { %v2365_v24 = vmax.f32 %v2361_v46, 0.0  ;;  %4171 = vrot.lane.b32.xlu0 %v4170_v22, %s4247_s18  ;;  %v3961_v45 = vpack.c.bf16 %v2483_v9, %v2482_v44  ;;  %v2484_v22 = vld [vmem:[%s5534_s8 + $0x20] sm:$0xff]  ;;  %v2485_v46 = vld [vmem:[%s5534_s8 + $0x28] sm:$0xff] }
 0x4c9   : > { %v2918_v44 = vld [vmem:[%s5536_s10 + $0x60] sm:$0xff]  ;;  %v2919_v9 = vld [vmem:[%s5536_s10 + $0x68] sm:$0xff] }
 0x4ca   : > { %v4175_v23 = vpack.i.bf16 %v2365_v24, %v2364_v29  ;;  %v2487_v24 = vld [vmem:[%s5534_s8 + $0x38] sm:$0xff] }
 0x4cc   : > { %4176 = vrot.lane.b32.xlu1 %v4175_v23, %s4247_s18  ;;  %v3967_v23 = vpack.c.bf16 %v2487_v24, %v2486_v47  ;;  %v2999_v47 = vld [vmem:[%s5538_s12 + $0x10] sm:$0xff]  ;;  %s3088_s18 = scalar_lea.sflag [#allocation3], %s458_s28 }
 0x53a   : > { %v4172_v51 = vpop.permute.xlu0 %4171 }
 0x53b   : > { %v4174_v16 = vunpack.i.h.bf16 %v4172_v51  ;;  %v4173_v52 = vunpack.i.l.bf16 %v4172_v51  ;;  %v3397_v51 = vld [vmem:[%s5534_s8 + $0xa0] sm:$0xff] }
 0x53d   : > { %v2379_v54 = vsel %vm2378_vm11, %v4173_v52, %v4174_v16  ;;  %v3398_v16 = vld [vmem:[%s5534_s8 + $0xa8] sm:$0xff] }
 0x53e   : > { %v4177_v53 = vpop.permute.xlu1 %4176  ;;  %v2383_v58 = vmax.f32 %v2362_v42, %v2379_v54  ;;  %v3973_v52 = vpack.c.bf16 %v3398_v16, %v3397_v51  ;;  %v3400_v54 = vld [vmem:[%s5534_s8 + $0xb8] sm:$0xff]  ;;  %v3003_v16 = vld [vmem:[%s5538_s12 + $0x30] sm:$0xff] }
 0x53f   : > { %v4179_v55 = vunpack.i.h.bf16 %v4177_v53  ;;  %v4178_v56 = vunpack.i.l.bf16 %v4177_v53  ;;  %v3399_v53 = vld [vmem:[%s5534_s8 + $0xb0] sm:$0xff] }
 0x541   : > { %v2380_v57 = vsel %vm2378_vm11, %v4178_v56, %v4179_v55  ;;  %v3976_v55 = vpack.c.bf16 %v3400_v54, %v3399_v53  ;;  %v3401_v56 = vld [vmem:[%s5534_s8 + $0xc0] sm:$0xff] }
 0x542   : > { %v2384_v59 = vmax.f32 %v2364_v29, %v2380_v57  ;;  %v3964_v29 = vpack.c.bf16 %v2485_v46, %v2484_v22  ;;  %v3402_v57 = vld [vmem:[%s5534_s8 + $0xc8] sm:$0xff]  ;;  %v2920_v22 = vld [vmem:[%s5536_s10 + $0x70] sm:$0xff]  ;;  %v2997_v46 = vld [vmem:[%s5538_s12] sm:$0xff] }
 0x544   : > { %v3936_v60 = vpack.c.bf16 %v2384_v59, %v2383_v58  ;;  %v3979_v58 = vpack.c.bf16 %v3402_v57, %v3401_v56  ;;  %v3403_v59 = vld [vmem:[%s5534_s8 + $0xd0] sm:$0xff] }
 0x546   : > { %3938 = vmatprep.subr.msk.bf16.mxu0 %vm3937_vm12, %v3936_v60 }
 0x547   : > { %3941 = vmatpush3.bf16.msk.msra.mxu0 %vm3937_vm12, %v3936_v60  ;;  %v3404_v60 = vld [vmem:[%s5534_s8 + $0xd8] sm:$0xff] }
 0x548   : > { %3942 = vmatprep.subr.bf16.mxu0 %v4248_v26  ;;  %v3982_v61 = vpack.c.bf16 %v3404_v60, %v3403_v59 }
 0x54a   : > { %3551 = vmatmul.mubr.msk.f32.vlgmr.msra.gmra.mrb[20].mxu0 %vm2387_vm10, %v2386_v63  ;;  %v3406_v63 = vld [vmem:[%s5534_s8 + $0xe8] sm:$0xff] }
 0x54b   : > { %3944 = vmatpush3.bf16.msra.mxu0 %v3943_v0  ;;  %3573 = vmatprep.mubr.msk.f32.mxu0 %vm4249_vm13, %v4244_v7  ;;  %v3985_v0 = vpack.c.bf16 %v3406_v63, %v3405_v62 }
 0x54c   : > { %3945 = vmatprep.subr.bf16.mxu0 %v4248_v26 }
 0x54f   : > { %3947 = vmatpush3.bf16.msra.mxu0 %v3946_v3  ;;  %v3988_v3 = vpack.c.bf16 %v3409_v2, %v3408_v1 }
 0x550   : > { %3948 = vmatprep.subr.bf16.mxu0 %v4248_v26 }
 0x553   : > { %3950 = vmatpush3.bf16.msra.mxu0 %v3949_v6  ;;  %v3411_v6 = vld [vmem:[%s5534_s8 + $0x108] sm:$0xff] }
 0x554   : > { %3951 = vmatprep.subr.bf16.mxu0 %v4248_v26  ;;  %v3991_v8 = vpack.c.bf16 %v3411_v6, %v3410_v5  ;;  %v3005_v6 = vld [vmem:[%s5538_s12 + $0x40] sm:$0xff] }
 0x557   : > { %3953 = vmatpush3.bf16.msra.mxu0 %v3952_v18  ;;  %v3417_v18 = vld [vmem:[%s5534_s8 + $0x138] sm:$0xff] }
 0x558   : > { %3954 = vmatprep.subr.bf16.mxu0 %v4248_v26  ;;  %v4000_v19 = vpack.c.bf16 %v3417_v18, %v3416_v17 }
 0x55b   : > { %3956 = vmatpush3.bf16.msra.mxu0 %v3955_v28  ;;  %v2908_v28 = vld [vmem:[%s5536_s10 + $0x10] sm:$0xff] }
 0x55c   : > { %3957 = vmatprep.subr.bf16.mxu0 %v4248_v26  ;;  %v4021_v33 = vpack.c.bf16 %v2909_v32, %v2908_v28 }
 0x61d   : > { %v3552_v34 = vpop.f32.mrb[20].mxu0 }
 0x61e   : > { %v2476_v35 = vrot.slane %v3552_v34, 5  ;;  %v2463_v36 = vpop.f32.mrb[21].mxu0  ;;  %v2911_v34 = vld [vmem:[%s5536_s10 + $0x28] sm:$0xff] }
 0x61f   : > { %v2475_v37 = vrot.slane %v2463_v36, 5 }
 0x621   : > { %v2477_v40 = vsel %vm2474_vm14, %v2475_v37, %v2476_v35  ;;  %v4024_v35 = vpack.c.bf16 %v2911_v34, %v2910_v10  ;;  %v2913_v37 = vld [vmem:[%s5536_s10 + $0x38] sm:$0xff] }
 0x622   : > { %v5257_v41 = vmax.f32 %v2463_v36, %v2477_v40  ;;  %v2912_v36 = vld [vmem:[%s5536_s10 + $0x30] sm:$0xff]  ;;  %v2915_v40 = vld [vmem:[%s5536_s10 + $0x48] sm:$0xff] }
 0x623   : > { %v4027_v38 = vpack.c.bf16 %v2913_v37, %v2912_v36 }
 0x624   : > { %v2829_v42 = vrot.slane %v5257_v41, 4  ;;  %v2502_v43 = vrot.slane %v5257_v41, 1  ;;  %v2659_v4 = vrot.slane %v5257_v41, 2  ;;  %v2744_v21 = vrot.slane %v5257_v41, 3 }
 0x626   : > { %3574 = vmatmul.mubr.msk.f32.vlgmr.msra.gmra.mrb[22].mxu0 %vm2503_vm15, %v2502_v43  ;;  %3666 = vmatmul.mubr.msk.f32.vlgmr.msra.gmra.mrb[36].mxu1 %vm2503_vm15, %v2829_v42  ;;  %v2917_v42 = vld [vmem:[%s5536_s10 + $0x58] sm:$0xff] }
 0x627   : > { %3959 = vmatpush3.bf16.msra.mxu0 %v3958_v31  ;;  %3596 = vmatprep.mubr.msk.f32.mxu0 %vm4249_vm13, %v4244_v7  ;;  %v2916_v31 = vld [vmem:[%s5536_s10 + $0x50] sm:$0xff] }
 0x628   : > { %3960 = vmatprep.subr.bf16.mxu0 %v4248_v26  ;;  %3723 = vmatprep.mubr.msk.f32.mxu1 %vm4249_vm13, %v4244_v7  ;;  %v4033_v43 = vpack.c.bf16 %v2917_v42, %v2916_v31 }
 0x62b   : > { %3962 = vmatpush3.bf16.msra.mxu0 %v3961_v45  ;;  %v4036_v45 = vpack.c.bf16 %v2919_v9, %v2918_v44 }
 0x62c   : > { %3963 = vmatprep.subr.bf16.mxu0 %v4248_v26 }
 0x62f   : > { %3965 = vmatpush3.bf16.msra.mxu0 %v3964_v29  ;;  %v2998_v29 = vld [vmem:[%s5538_s12 + $0x8] sm:$0xff] }
 0x630   : > { %3966 = vmatprep.subr.bf16.mxu0 %v4248_v26  ;;  %v4039_v24 = vpack.c.bf16 %v2998_v29, %v2997_v46 }
 0x632   : > { %4040 = vmatpush3.bf16.msra.mxu1 %v4039_v24 }
 0x633   : > { %3968 = vmatpush3.bf16.msra.mxu0 %v3967_v23  ;;  %v3000_v23 = vld [vmem:[%s5538_s12 + $0x18] sm:$0xff]  ;;  %4041 = vmatprep.subr.bf16.mxu1 %v4248_v26 }
 0x634   : > { %3969 = vmatprep.subr.bf16.mxu0 %v4248_v26  ;;  %v4042_v48 = vpack.c.bf16 %v3000_v23, %v2999_v47 }
 0x636   : > { %4043 = vmatpush3.bf16.msra.mxu1 %v4042_v48 }
 0x637   : > { %3971 = vmatpush3.bf16.msra.mxu0 %v3970_v50  ;;  %v3002_v50 = vld [vmem:[%s5538_s12 + $0x28] sm:$0xff]  ;;  %4044 = vmatprep.subr.bf16.mxu1 %v4248_v26 }
 0x638   : > { %3972 = vmatprep.subr.bf16.mxu0 %v4248_v26  ;;  %v4045_v51 = vpack.c.bf16 %v3002_v50, %v3001_v49 }
 0x63a   : > { %3597 = vmatmul.mubr.msk.f32.vlgmr.msra.gmra.mrb[24].mxu0 %vm2503_vm15, %v5257_v41  ;;  %v4030_v41 = vpack.c.bf16 %v2915_v40, %v2914_v39  ;;  %4046 = vmatpush3.bf16.msra.mxu1 %v4045_v51 }
 0x63b   : > { %3974 = vmatpush3.bf16.msra.mxu0 %v3973_v52  ;;  %3619 = vmatprep.mubr.msk.f32.mxu0 %vm4249_vm13, %v4244_v7  ;;  %v3004_v52 = vld [vmem:[%s5538_s12 + $0x38] sm:$0xff] }
 0x63c   : > { %3975 = vmatprep.subr.bf16.mxu0 %v4248_v26  ;;  %v4048_v53 = vpack.c.bf16 %v3004_v52, %v3003_v16  ;;  %4047 = vmatprep.subr.bf16.mxu1 %v4248_v26 }
 0x63e   : > { %4049 = vmatpush3.bf16.msra.mxu1 %v4048_v53 }
 0x63f   : > { %3977 = vmatpush3.bf16.msra.mxu0 %v3976_v55  ;;  %4050 = vmatprep.subr.bf16.mxu1 %v4248_v26 }
 0x640   : > { %3978 = vmatprep.subr.bf16.mxu0 %v4248_v26 }
 0x643   : > { %3980 = vmatpush3.bf16.msra.mxu0 %v3979_v58 }
 0x644   : > { %3981 = vmatprep.subr.bf16.mxu0 %v4248_v26 }
 0x647   : > { %3983 = vmatpush3.bf16.msra.mxu0 %v3982_v61 }
 0x648   : > { %3984 = vmatprep.subr.bf16.mxu0 %v4248_v26 }
 0x64b   : > { %3986 = vmatpush3.bf16.msra.mxu0 %v3985_v0 }
 0x64c   : > { %3987 = vmatprep.subr.bf16.mxu0 %v4248_v26 }
 0x64e   : > { %3620 = vmatmul.mubr.msk.f32.vlgmr.msra.gmra.mrb[26].mxu0 %vm2503_vm15, %v2659_v4 }
 0x64f   : > { %3989 = vmatpush3.bf16.msra.mxu0 %v3988_v3  ;;  %3642 = vmatprep.mubr.msk.f32.mxu0 %vm4249_vm13, %v4244_v7  ;;  %v2903_v3 = vld [vmem:[%s5535_s9] sm:$0x1] }
 0x650   : > { %3990 = vmatprep.subr.bf16.mxu0 %v4248_v26 }
 0x653   : > { %3992 = vmatpush3.bf16.msra.mxu0 %v3991_v8  ;;  %v3006_v8 = vld [vmem:[%s5538_s12 + $0x48] sm:$0xff] }
 0x654   : > { %3993 = vmatprep.subr.bf16.mxu0 %v4248_v26  ;;  %v4051_v11 = vpack.c.bf16 %v3006_v8, %v3005_v6 }
 0x656   : > { %4052 = vmatpush3.bf16.msra.mxu1 %v4051_v11 }
 0x657   : > { %3995 = vmatpush3.bf16.msra.mxu0 %v3994_v13  ;;  %3721 = vmatprep.subr.mxu1 %v4244_v7  ;;  %v2921_v13 = vld [vmem:[%s5537_s11] sm:$0x1] }
 0x658   : > { %3996 = vmatprep.subr.bf16.mxu0 %v4248_v26 }
 0x65a   : > { %3722 = vmatpush3.msk.msra.mxu1 %vm490_vm0, %v3007_v12  ;;  %vm3085_vm0 = vcmask 73728  }
 0x65b   : > { %3998 = vmatpush3.bf16.msra.mxu0 %v3997_v30 }
 0x65c   : > { %3999 = vmatprep.subr.bf16.mxu0 %v4248_v26 }
 0x65f   : > { %4001 = vmatpush3.bf16.msra.mxu0 %v4000_v19 }
 0x660   : > { %4017 = vmatprep.subr.bf16.mxu0 %v4248_v26 }
 0x662   : > { %3643 = vmatmul.mubr.msk.f32.vlgmr.msra.gmra.mrb[28].mxu0 %vm2503_vm15, %v2744_v21 }
 0x663   : > { %3698 = vmatprep.mubr.msk.f32.mxu0 %vm4249_vm13, %v4244_v7  ;;  %4019 = vmatpush3.bf16.msra.mxu0 %v4018_v27 }
 0x664   : > { %4020 = vmatprep.subr.bf16.mxu0 %v4248_v26 }
 0x667   : > { %4022 = vmatpush3.bf16.msra.mxu0 %v4021_v33 }
 0x668   : > { %4023 = vmatprep.subr.bf16.mxu0 %v4248_v26 }
 0x66b   : > { %4025 = vmatpush3.bf16.msra.mxu0 %v4024_v35 }
 0x66c   : > { %4026 = vmatprep.subr.bf16.mxu0 %v4248_v26 }
 0x66f   : > { %4028 = vmatpush3.bf16.msra.mxu0 %v4027_v38 }
 0x670   : > { %4029 = vmatprep.subr.bf16.mxu0 %v4248_v26 }
 0x673   : > { %4031 = vmatpush3.bf16.msra.mxu0 %v4030_v41 }
 0x674   : > { %4032 = vmatprep.subr.bf16.mxu0 %v4248_v26 }
 0x677   : > { %4034 = vmatpush3.bf16.msra.mxu0 %v4033_v43 }
 0x678   : > { %4035 = vmatprep.subr.bf16.mxu0 %v4248_v26 }
 0x67b   : > { %4037 = vmatpush3.bf16.msra.mxu0 %v4036_v45 }
 0x67c   : > { %3696 = vmatprep.subr.mxu0 %v4244_v7  ;;  %v3008_v7 = vld [vmem:[%s5539_s13] sm:$0x1] }
 0x67f   : > { %3697 = vmatpush3.msra.mxu0 %v2920_v22 }
 0x6f9   : > { %v2572_v54 = vpop.f32.mrb[22].mxu0  ;;  %v2898_v55 = vpop.f32.mrb[36].mxu1 }
 0x6fa   : > { %v3575_v56 = vpop.f32.mrb[23].mxu0  ;;  %v3667_v57 = vpop.f32.mrb[37].mxu1 }
 0x70d   : > { %v2644_v58 = vpop.f32.mrb[24].mxu0 }
 0x70e   : > { %v2645_v59 = vadd.f32 %v2644_v58, %v2572_v54  ;;  %v3598_v60 = vpop.f32.mrb[25].mxu0 }
 0x721   : > { %v2728_v61 = vpop.f32.mrb[26].mxu0 }
 0x722   : > { %v2732_v62 = vadd.f32 %v2728_v61, %v2645_v59  ;;  %v3621_v63 = vpop.f32.mrb[27].mxu0 }
 0x735   : > { %v2813_v0 = vpop.f32.mrb[28].mxu0 }
 0x736   : > { %v2817_v1 = vadd.f32 %v2813_v0, %v2732_v62  ;;  %v3644_v2 = vpop.f32.mrb[29].mxu0 }
 0x738   : > { %v2902_v4 = vadd.f32 %v2898_v55, %v2817_v1 }
 0x73a   : > { %v2904_v5 = vadd.f32 %v2903_v3, %v2902_v4 }
 0x73c   : > { %v2905_v26 = vmax.f32 %v2904_v5, 0.0 }
 0x73e   : > { %3699 = vmatmul.mubr.msk.f32.vlgmr.msra.gmra.mrb[30].mxu0 %vm2922_vm1, %v2905_v26 }
 0x811   : > { %v2992_v14 = vpop.f32.mrb[30].mxu0 }
 0x812   : > { %v2993_v15 = vadd.f32 %v2992_v14, %v2921_v13  ;;  %v3700_v30 = vpop.f32.mrb[31].mxu0 }
 0x814   : > { %v2996_v17 = vmax.f32 %v2993_v15, 0.0 }
 0x816   : > { %3724 = vmatmul.mubr.msk.f32.vlgmr.msra.gmra.mrb[38].mxu1 %vm1818_vm7, %v2996_v17 }
 0x8e9   : > { %v3081_v18 = vpop.f32.mrb[38].mxu1 }
 0x8ea   : > { %v3082_v19 = vadd.f32 %v3081_v18, %v3008_v7  ;;  %v3725_v21 = vpop.f32.mrb[39].mxu1 }
 0x8ec   : > { %3086 = vst.msk [vmem:[%s459_s25] sm:$0x1] %vm3085_vm0, %v3082_v19 }
 0x8ed   : > { %4193 = shalt.err (!%p4190_p3)
}
 0x8ee   : > { %s4194_s28 = scalar_lea.hbm %s5484_s22, 16  ;;  %s4198_s25 = scalar_lea.hbm %s5540_s14, 32 }
 0x8ef   : > { %p4195_p4 = scmp.ne.s32.totalorder %s5484_s22, %s4194_s28  ;;  %p4199_p9 = scmp.lt.u32.totalorder %s5484_s22, %s5540_s14 }
 0x8f0   : > { %p4200_p10 = scmp.lt.u32.totalorder %s4198_s25, %s4194_s28  ;;  %p4202_p12 = scmp.lt.u32.totalorder %s4194_s28, %s5484_s22 }
 0x8f1   : > { %p4196_p7 = pnand %p4195_p4, %p4364_p5 }
 0x8f2   : > { %p4201_p11 = por %p4200_p10, %p4199_p9 }
 0x8f3   : > { %p4197_p8 = pneg %p4196_p7 }
 0x8f4   : > { %p4203_p13 = por %p4202_p12, %p4201_p11 }
 0x8f6   : > { %p4204_p0 = pnand %p4203_p13, %p4197_p8 }
 0x8f8   : > { %4207 = shalt.err (!%p4204_p0)
}
 0x8f9   : > { %4105 = dma.vmem_to_hbm [thread:$0]  (%p4364_p5), %s5486_s26, 16, %s5484_s22, %s3088_s18  }
 0x8fa PF: > { %s5555_s27 = sld [smem:[#allocation5_spill]]  ;;  %p4111_p1 = scmp.ge.s32.totalorder %s4242_s16, 2 }
 0x8fc   : > { %p4108_p2 = pnand %p4111_p1, %p4368_p6 }
 0x900   : > { %s3112_s20 = sand.u32 1, %s5555_s27  }
 0x901   : > { %s3113_s24 = scalar_lea.sflag [#allocation3], %s3112_s20 }
 0x902   : > { %4225 = dma.done.wait (!%p4108_p2), %s3113_s24, 16  }
 0x903   : > { %4227 = vsyncadd (!%p4108_p2), %s3113_s24, 4294967280  ;;  %s5557_s16 = sld [smem:[#allocation7_spill]]  ;;  %s5558_s28 = sld [smem:[#allocation6_spill]] }
 0x904   : > { %s5559_s15 = sld [smem:[#allocation8_spill]]  ;;  %s5560_s29 = smov %s4234_s30 }
 0x909   : > { %p24_p3 = scmp.ge.s32.totalorder %s5557_s16, 4   ;;  %s5561_s30 = smov %s5558_s28 }
 0x90b   :  { %26 = sbr.rel (!%p24_p3) target bundleno = 3 (0x3), region = 127 }
 0x912   :  { %3117 = vsyncpa [#allocation3], 1 }
 0x913   :  { %3119 = vsyncpa [#allocation3 + $0x1], 1 }

</bundles_post_ra>
